<compile_context>
chip_gen: v5e
topology: v5e:2x2
jax: 0.10.0
libtpu: 0.0.40
codegen_flags: <defaults>
</compile_context>

<pallas_src>
import functools

import jax
import jax.numpy as jnp
from jax.experimental import pallas as pl
from jax.experimental.pallas import tpu as pltpu


def _round_up(x, m):
    return ((x + m - 1) // m) * m


@functools.lru_cache(maxsize=None)
def _vmem_capacity_bytes():
    try:
        return int(pltpu.get_tpu_info().vmem_capacity_bytes)
    except Exception:
        return 64 * 1024 * 1024   # conservative fallback (v7x per-TC VMEM)


# ----------------------------------------------------------------------------
# Fused Pallas kernel: all GIN layers + fused pooling
# grid = (num_layers, N_pad // TM, N_pad // TK)   (all "arbitrary")
# ----------------------------------------------------------------------------
def _fused_gin_kernel(adj_ref, w1_ref, b1_ref, w2_ref, b2_ref, p_ref,
                      out_ref, acc_ref, x_ref, *adj_scratch,
                      tm, tk, adj_resident):
    l = pl.program_id(0)          # layer
    i = pl.program_id(1)          # row tile
    k = pl.program_id(2)          # contraction tile (innermost)
    nl = pl.num_programs(0)
    nk = pl.num_programs(2)
    last_k = k == nk - 1
    first_step = (l == 0) & (i == 0) & (k == 0)

    ri = pl.multiple_of(i * tm, tm)   # row offset of this tile
    rk = pl.multiple_of(k * tk, tk)   # column offset of this tile

    # Zero the resident pooled-output accumulator at the very first grid step.
    @pl.when(first_step)
    def _init_out():
        out_ref[...] = jnp.zeros_like(out_ref)

    # --- adjacency tile: int8 (0/1) widened to bf16 just before the MXU ---
    if adj_resident:
        adj_vmem_ref, adj_sem = adj_scratch

        # Fetch the whole int8 adjacency into VMEM exactly once (grid is
        # sequential on one TensorCore, so later steps see the loaded copy).
        @pl.when(first_step)
        def _load_adj():
            cp = pltpu.make_async_copy(adj_ref, adj_vmem_ref, adj_sem)
            cp.start()
            cp.wait()

        adj_i8 = adj_vmem_ref[pl.ds(ri, tm), pl.ds(rk, tk)]
    else:
        adj_i8 = adj_ref[...]                      # (tm, tk) int8 streamed tile

    adj_bf = adj_i8.astype(jnp.bfloat16)           # 0/1 exact

    # Zero the per-row-tile aggregation accumulator at the start of each k-loop.
    @pl.when(k == 0)
    def _init_acc():
        acc_ref[...] = jnp.zeros_like(acc_ref)

    # ---- neighbor aggregation (k reduction) ----
    @pl.when(l == 0)
    def _agg_first_layer():
        # x_init = ones([N, 1])  =>  A @ x is the row degree.
        # XLU lane-reduce + VPU broadcast add; no K=1 matmul on the MXU.
        deg = jnp.sum(adj_bf.astype(jnp.float32), axis=-1, keepdims=True)
        acc_ref[...] = acc_ref[...] + deg          # broadcast into all lanes

    @pl.when(l > 0)
    def _agg_hidden_layer():
        rs = (l + 1) & 1                           # read slot = previous layer
        xk = x_ref[rs, pl.ds(rk, tk), :]           # (tk, H) bf16, no cast needed
        acc_ref[...] += jnp.dot(adj_bf, xk, preferred_element_type=jnp.float32)

    # ---- finalize on last k tile: self term + Linear/ReLU/Linear/ReLU ----
    @pl.when(last_k & (l == 0))
    def _mlp1_first_layer():
        # (deg + 1) @ W1 with W1 of shape [1, H]: broadcast outer product (VPU).
        w1_row0 = w1_ref[0, 0:1, :].astype(jnp.float32)        # (1, H)
        acc_ref[...] = (acc_ref[...] + 1.0) * w1_row0 + b1_ref[0]

    @pl.when(last_k & (l > 0))
    def _mlp1_hidden_layer():
        rs = (l + 1) & 1
        x_rows = x_ref[rs, pl.ds(ri, tm), :].astype(jnp.float32)  # self term (eps=0)
        h_in = (acc_ref[...] + x_rows).astype(jnp.bfloat16)
        acc_ref[...] = jnp.dot(h_in, w1_ref[0],
                               preferred_element_type=jnp.float32) + b1_ref[0]

    @pl.when(last_k)
    def _finalize():
        h = jnp.maximum(acc_ref[...], 0.0).astype(jnp.bfloat16)
        h = jnp.dot(h, w2_ref[0], preferred_element_type=jnp.float32) + b2_ref[0]
        h_bf = jnp.maximum(h, 0.0).astype(jnp.bfloat16)
        ws = l & 1                                 # write slot = this layer
        x_ref[ws, pl.ds(ri, tm), :] = h_bf

        # Fused global_add_pool (both levels folded into P): out += P[:, rows] @ h
        @pl.when(l == nl - 1)
        def _pool():
            p_tile = p_ref[:, pl.ds(ri, tm)]       # bf16 slice of resident P
            out_ref[...] += jnp.dot(p_tile, h_bf,
                                    preferred_element_type=jnp.float32)


# ----------------------------------------------------------------------------
# Wrapper: padding, weight stacking, VMEM planning, pallas_call
# ----------------------------------------------------------------------------
@functools.partial(jax.jit, static_argnames=("force_streamed",))
def nested_gin_forward(params, adj, node_to_subgraph_onehot,
                       subgraph_to_graph_onehot, force_streamed=False):
    conv_layers = params["conv_layers"]
    num_layers = len(conv_layers)
    n = adj.shape[0]
    hidden = conv_layers[0][2].shape[1]            # W2 output dim
    g = subgraph_to_graph_onehot.shape[0]

    h_pad = _round_up(hidden, 128)                 # lane-dense features / weights
    g_pad = _round_up(g, 16)
    n_pad = _round_up(n, 256)                      # decoupled from the tile size

    # ---- static VMEM planning (conservative: double-buffered where Pallas does) ----
    vmem_cap = _vmem_capacity_bytes()
    budget = int(vmem_cap * 0.75)

    bytes_x = 2 * n_pad * h_pad * 2                            # persistent bf16 x (2 slots)
    bytes_out = 2 * g_pad * h_pad * 4                          # resident pooled acc
    bytes_p = 2 * g_pad * n_pad * 2                            # resident bf16 P
    bytes_w = 2 * 2 * (h_pad * h_pad * 2) + 2 * 2 * (h_pad * 4)  # W1/W2 bf16 + b f32
    fixed = bytes_x + bytes_out + bytes_p + bytes_w

    adj_resident = (n_pad * n_pad + fixed + 256 * h_pad * 4) <= budget
    if force_streamed:
        adj_resident = False

    # Largest tile (divisor of n_pad) whose working set fits the budget.
    t = 256
    for cand in (2048, 1024, 512, 256):
        if n_pad % cand != 0:
            continue
        adj_bytes = n_pad * n_pad if adj_resident else 2 * cand * cand
        if adj_bytes + cand * h_pad * 4 + fixed <= budget:
            t = cand
            break
    tm = tk = t

    adj_bytes = n_pad * n_pad if adj_resident else 2 * tm * tk
    total_bytes = fixed + adj_bytes + tm * h_pad * 4
    vmem_limit = max(total_bytes + (4 << 20), 32 << 20)
    vmem_limit = min(vmem_limit, int(vmem_cap * 0.9))

    # ---- operand preparation ----
    # Adjacency in int8 (0/1 exact); zero-padded rows/cols keep padded nodes inert.
    adj_p = jnp.zeros((n_pad, n_pad), jnp.int8).at[:n, :n].set(adj.astype(jnp.int8))

    # Fold the two global_add_pool's into one 0/1 matrix: P = P_graph @ P_sub  [G, N].
    p_comb = subgraph_to_graph_onehot @ node_to_subgraph_onehot
    p_p = jnp.zeros((g_pad, n_pad), jnp.bfloat16).at[:g, :n].set(
        p_comb.astype(jnp.bfloat16))

    # Stack + zero-pad per-layer weights: W bf16 [L, h_pad, h_pad], b f32 [L, 1, h_pad].
    # Layer 0's W1 is [1, hidden] and is embedded in row 0 (only row 0 is used).
    w1s, b1s, w2s, b2s = [], [], [], []
    for (w1, b1, w2, b2) in conv_layers:
        w1s.append(jnp.zeros((h_pad, h_pad), jnp.float32)
                   .at[: w1.shape[0], :hidden].set(w1).astype(jnp.bfloat16))
        w2s.append(jnp.zeros((h_pad, h_pad), jnp.float32)
                   .at[:hidden, :hidden].set(w2).astype(jnp.bfloat16))
        b1s.append(jnp.zeros((1, h_pad), jnp.float32).at[0, :hidden].set(b1))
        b2s.append(jnp.zeros((1, h_pad), jnp.float32).at[0, :hidden].set(b2))
    w1s = jnp.stack(w1s)
    b1s = jnp.stack(b1s)
    w2s = jnp.stack(w2s)
    b2s = jnp.stack(b2s)

    # ---- specs / scratch ----
    if adj_resident:
        adj_spec = pl.BlockSpec(memory_space=pl.ANY)          # raw HBM ref; DMA once
        extra_scratch = [pltpu.VMEM((n_pad, n_pad), jnp.int8),
                         pltpu.SemaphoreType.DMA]
    else:
        adj_spec = pl.BlockSpec((tm, tk), lambda l, i, k: (i, k))
        extra_scratch = []

    grid = (num_layers, n_pad // tm, n_pad // tk)
    kernel = functools.partial(_fused_gin_kernel, tm=tm, tk=tk,
                               adj_resident=adj_resident)

    # TODO(synk): for very large N, x does not fit a single VMEM scratch; a
    # block-sparse / CSR-tile formulation with scalar prefetch would be needed.
    # TODO(synk): on v7x, split the row-tile axis across the 2 TensorCores
    # (core_map + VMEM_SHARED x, cross-core out reduce) for up to ~2x.
    out = pl.pallas_call(
        kernel,
        out_shape=jax.ShapeDtypeStruct((g_pad, h_pad), jnp.float32),
        grid_spec=pltpu.PrefetchScalarGridSpec(
            num_scalar_prefetch=0,
            grid=grid,
            in_specs=[
                adj_spec,                                                    # A (int8)
                pl.BlockSpec((1, h_pad, h_pad), lambda l, i, k: (l, 0, 0)),  # W1[l] bf16
                pl.BlockSpec((1, 1, h_pad), lambda l, i, k: (l, 0, 0)),      # b1[l] f32
                pl.BlockSpec((1, h_pad, h_pad), lambda l, i, k: (l, 0, 0)),  # W2[l] bf16
                pl.BlockSpec((1, 1, h_pad), lambda l, i, k: (l, 0, 0)),      # b2[l] f32
                pl.BlockSpec((g_pad, n_pad), lambda l, i, k: (0, 0)),        # P resident
            ],
            out_specs=pl.BlockSpec((g_pad, h_pad), lambda l, i, k: (0, 0)),
            scratch_shapes=[
                pltpu.VMEM((tm, h_pad), jnp.float32),          # aggregation accumulator
                pltpu.VMEM((2, n_pad, h_pad), jnp.bfloat16),   # persistent node features
            ] + extra_scratch,                                 # (+ resident adj + DMA sem)
        ),
        compiler_params=pltpu.CompilerParams(
            # layer/k are sequential reductions; the row axis shares the
            # persistent x scratch across layers so it stays on one core.
            dimension_semantics=("arbitrary", "arbitrary", "arbitrary"),
            vmem_limit_bytes=int(vmem_limit),
        ),
    )(adj_p, w1s, b1s, w2s, b2s, p_p)

    return out[:g, :hidden]


# ----------------------------------------------------------------------------
# Parameter init (deterministic, mirrors module __init__ shapes)
# ----------------------------------------------------------------------------
def init_params(key, num_layers, hidden):
    params = {}
    keys = jax.random.split(key, 4 * num_layers + 4)
    ki = 0

    def lin(shape_in, shape_out):
        nonlocal ki
        w = jax.random.normal(keys[ki], (shape_in, shape_out), jnp.float32) * 0.1
        ki += 1
        b = jax.random.normal(keys[ki], (shape_out,), jnp.float32) * 0.01
        ki += 1
        return w, b

    # conv1: Sequential(Linear(1, hidden), ReLU, Linear(hidden, hidden), ReLU)
    params["conv_layers"] = []
    w1, b1 = lin(1, hidden)
    w2, b2 = lin(hidden, hidden)
    params["conv_layers"].append((w1, b1, w2, b2))
    # convs: num_layers - 1 of Sequential(Linear(hidden,hidden), ReLU, Linear(hidden,hidden), ReLU)
    for _ in range(num_layers - 1):
        w1, b1 = lin(hidden, hidden)
        w2, b2 = lin(hidden, hidden)
        params["conv_layers"].append((w1, b1, w2, b2))
    # lin1, lin2: defined in __init__ but unused in forward()
    params["lin1"] = lin(hidden, hidden)
    params["lin2"] = lin(hidden, hidden)
    return params


# ----------------------------------------------------------------------------
# Pure-JAX reference (exact f32) for correctness check
# ----------------------------------------------------------------------------
def reference_forward(params, adj, p_sub, p_graph):
    x = jnp.ones((adj.shape[0], 1), jnp.float32)
    for (w1, b1, w2, b2) in params["conv_layers"]:
        agg = adj @ x + x
        x = jnp.maximum(agg @ w1 + b1, 0.0)
        x = jnp.maximum(x @ w2 + b2, 0.0)
    x = p_sub @ x
    x = p_graph @ x
    return x


if __name__ == "__main__":
    key = jax.random.PRNGKey(0)
    num_layers = 3
    hidden = 32
    num_nodes = 16
    num_subgraphs = 8
    num_graphs = 2

    k_param, k_edge = jax.random.split(key)
    params = init_params(k_param, num_layers, hidden)

    # Random symmetric adjacency (dense), no self loops; A[dst, src] = 1.
    rand = jax.random.uniform(k_edge, (num_nodes, num_nodes))
    adj = (rand < 0.25).astype(jnp.float32)
    adj = jnp.maximum(adj, adj.T)
    adj = adj * (1.0 - jnp.eye(num_nodes, dtype=jnp.float32))

    # node_to_subgraph: 2 consecutive nodes per subgraph.
    node_to_subgraph = jnp.arange(num_nodes) // (num_nodes // num_subgraphs)
    p_sub = jax.nn.one_hot(node_to_subgraph, num_subgraphs, dtype=jnp.float32).T  # [S, N]

    # subgraph_to_graph: 4 consecutive subgraphs per graph.
    subgraph_to_graph = jnp.arange(num_subgraphs) // (num_subgraphs // num_graphs)
    p_graph = jax.nn.one_hot(subgraph_to_graph, num_graphs, dtype=jnp.float32).T  # [G, S]

    ref = reference_forward(params, adj, p_sub, p_graph)

    # bf16 is used for the 0/1 adjacency & P (exact), the persistent node
    # features, the weights, and MXU operands; all accumulation and biases
    # stay in f32, so a modest mixed-precision tolerance suffices.
    def check(out):
        assert out.shape == (num_graphs, hidden)
        assert jnp.allclose(out, ref, atol=3e-2, rtol=5e-2), \
            "Pallas output mismatch vs reference"

    # Resident-adjacency fast path (the small graph fits VMEM).
    out = nested_gin_forward(params, adj, p_sub, p_graph, force_streamed=False)
    out = jax.block_until_ready(out)
    check(out)

    # Streamed / tiled adjacency path (exercised explicitly for coverage).
    out_s = nested_gin_forward(params, adj, p_sub, p_graph, force_streamed=True)
    out_s = jax.block_until_ready(out_s)
    check(out_s)

    print("KERNEL_OK")
</pallas_src>

<mosaic_0001>
module attributes {stable_mosaic.version = 11 : i64} {
  func.func @_fused_gin_kernel(%arg0: i32, %arg1: i32, %arg2: i32, %arg3: memref<256x256xi8, #tpu.memory_space<any>>, %arg4: memref<1x128x128xbf16, #tpu.memory_space<vmem>>, %arg5: memref<1x1x128xf32, #tpu.memory_space<vmem>>, %arg6: memref<1x128x128xbf16, #tpu.memory_space<vmem>>, %arg7: memref<1x1x128xf32, #tpu.memory_space<vmem>>, %arg8: memref<16x256xbf16, #tpu.memory_space<vmem>>, %arg9: memref<16x128xf32, #tpu.memory_space<vmem>>, %arg10: memref<256x128xf32, #tpu.memory_space<vmem>>, %arg11: memref<2x256x128xbf16, #tpu.memory_space<vmem>>, %arg12: memref<256x256xi8, #tpu.memory_space<vmem>>, %arg13: memref<!tpu.dma_semaphore, #tpu.memory_space<semaphore_mem>>) attributes {dimension_semantics = [#tpu.dimension_semantics<arbitrary>, #tpu.dimension_semantics<arbitrary>, #tpu.dimension_semantics<arbitrary>], iteration_bounds = array<i64: 3, 1, 1>, scalar_prefetch = 0 : i64, scratch_operands = 4 : i64, tpu.core_type = #tpu.core_type<tc>, window_params = [{}, {transform_indices = @transform_1, window_bounds = array<i64: 1, 128, 128>}, {transform_indices = @transform_2, window_bounds = array<i64: 1, 1, 128>}, {transform_indices = @transform_3, window_bounds = array<i64: 1, 128, 128>}, {transform_indices = @transform_4, window_bounds = array<i64: 1, 1, 128>}, {pipeline_mode = #tpu.pipeline_mode<synchronous>, transform_indices = @transform_5, window_bounds = array<i64: 16, 256>}, {pipeline_mode = #tpu.pipeline_mode<synchronous>, transform_indices = @transform_6, window_bounds = array<i64: 16, 128>}]} {
    %c0_i32 = arith.constant 0 : i32
    %0 = arith.cmpi eq, %arg2, %c0_i32 : i32
    %c0_i32_0 = arith.constant 0 : i32
    %1 = arith.cmpi eq, %arg0, %c0_i32_0 : i32
    %c0_i32_1 = arith.constant 0 : i32
    %2 = arith.cmpi eq, %arg1, %c0_i32_1 : i32
    %3 = arith.andi %1, %2 : i1
    %c0_i32_2 = arith.constant 0 : i32
    %4 = arith.cmpi eq, %arg2, %c0_i32_2 : i32
    %5 = arith.andi %3, %4 : i1
    %c256_i32 = arith.constant 256 : i32
    %6 = arith.muli %arg1, %c256_i32 : i32
    %7 = tpu.assume_multiple %6, 256 : i32
    %c256_i32_3 = arith.constant 256 : i32
    %8 = arith.muli %arg2, %c256_i32_3 : i32
    %9 = tpu.assume_multiple %8, 256 : i32
    %10 = arith.extui %5 : i1 to i32
    %c0_i32_4 = arith.constant 0 : i32
    %11 = arith.cmpi ne, %10, %c0_i32_4 : i32
    scf.if %11 {
      %cst = arith.constant 0.000000e+00 : f32
      %37 = vector.broadcast %cst : f32 to vector<16x128xf32>
      %c0 = arith.constant 0 : index
      %c0_17 = arith.constant 0 : index
      %38 = vector.load %arg9[%c0, %c0_17] : memref<16x128xf32, #tpu.memory_space<vmem>>, vector<16x128xf32>
      tpu.vector_store %arg9[%c0, %c0_17], %37 {strides = array<i32>} : memref<16x128xf32, #tpu.memory_space<vmem>>, vector<16x128xf32>,
    } else {
    }
    %12 = arith.extui %5 : i1 to i32
    %c0_i32_5 = arith.constant 0 : i32
    %13 = arith.cmpi ne, %12, %c0_i32_5 : i32
    scf.if %13 {
      tpu.enqueue_dma source(%arg3 : memref<256x256xi8, #tpu.memory_space<any>>) target(%arg12 : memref<256x256xi8, #tpu.memory_space<vmem>>) target_semaphore(%arg13 : memref<!tpu.dma_semaphore, #tpu.memory_space<semaphore_mem>>)
      tpu.wait_dma2 semaphore(%arg13 : memref<!tpu.dma_semaphore, #tpu.memory_space<semaphore_mem>>) src(%arg3 : memref<256x256xi8, #tpu.memory_space<any>>) dst(%arg12 : memref<256x256xi8, #tpu.memory_space<vmem>>)
    } else {
    }
    %14 = arith.index_cast %7 : i32 to index
    %15 = arith.index_cast %9 : i32 to index
    %16 = vector.load %arg12[%14, %15] : memref<256x256xi8, #tpu.memory_space<vmem>>, vector<256x256xi8>
    %17 = arith.sitofp %16 : vector<256x256xi8> to vector<256x256xbf16>
    %c0_i32_6 = arith.constant 0 : i32
    %18 = arith.cmpi eq, %arg2, %c0_i32_6 : i32
    %19 = arith.extui %18 : i1 to i32
    %c0_i32_7 = arith.constant 0 : i32
    %20 = arith.cmpi ne, %19, %c0_i32_7 : i32
    scf.if %20 {
      %cst = arith.constant 0.000000e+00 : f32
      %37 = vector.broadcast %cst : f32 to vector<256x128xf32>
      %c0 = arith.constant 0 : index
      %c0_17 = arith.constant 0 : index
      %38 = vector.load %arg10[%c0, %c0_17] : memref<256x128xf32, #tpu.memory_space<vmem>>, vector<256x128xf32>
      tpu.vector_store %arg10[%c0, %c0_17], %37 {strides = array<i32>} : memref<256x128xf32, #tpu.memory_space<vmem>>, vector<256x128xf32>,
    } else {
    }
    %c0_i32_8 = arith.constant 0 : i32
    %21 = arith.cmpi eq, %arg0, %c0_i32_8 : i32
    %22 = arith.extui %21 : i1 to i32
    %c0_i32_9 = arith.constant 0 : i32
    %23 = arith.cmpi ne, %22, %c0_i32_9 : i32
    scf.if %23 {
      %37 = arith.extf %17 : vector<256x256xbf16> to vector<256x256xf32>
      %cst = arith.constant dense<0.000000e+00> : vector<256xf32>
      %38 = vector.multi_reduction <add>, %37, %cst [1] : vector<256x256xf32> to vector<256xf32>
      %39 = vector.shape_cast %38 : vector<256xf32> to vector<256x1xf32>
      %c0 = arith.constant 0 : index
      %c0_17 = arith.constant 0 : index
      %40 = vector.load %arg10[%c0, %c0_17] : memref<256x128xf32, #tpu.memory_space<vmem>>, vector<256x128xf32>
      %41 = vector.broadcast %39 : vector<256x1xf32> to vector<256x128xf32>
      %42 = arith.addf %40, %41 : vector<256x128xf32>
      %c0_18 = arith.constant 0 : index
      %c0_19 = arith.constant 0 : index
      %43 = vector.load %arg10[%c0_18, %c0_19] : memref<256x128xf32, #tpu.memory_space<vmem>>, vector<256x128xf32>
      tpu.vector_store %arg10[%c0_18, %c0_19], %42 {strides = array<i32>} : memref<256x128xf32, #tpu.memory_space<vmem>>, vector<256x128xf32>,
    } else {
    }
    %c0_i32_10 = arith.constant 0 : i32
    %24 = arith.cmpi sgt, %arg0, %c0_i32_10 : i32
    %25 = arith.extui %24 : i1 to i32
    %c0_i32_11 = arith.constant 0 : i32
    %26 = arith.cmpi ne, %25, %c0_i32_11 : i32
    scf.if %26 {
      %c1_i32 = arith.constant 1 : i32
      %37 = arith.addi %arg0, %c1_i32 : i32
      %c1_i32_17 = arith.constant 1 : i32
      %38 = arith.andi %37, %c1_i32_17 : i32
      %39 = arith.index_cast %38 : i32 to index
      %40 = arith.index_cast %9 : i32 to index
      %c0 = arith.constant 0 : index
      %41 = vector.load %arg11[%39, %40, %c0] : memref<2x256x128xbf16, #tpu.memory_space<vmem>>, vector<1x256x128xbf16>
      %42 = vector.shape_cast %41 : vector<1x256x128xbf16> to vector<256x128xbf16>
      %c0_18 = arith.constant 0 : index
      %c0_19 = arith.constant 0 : index
      %43 = vector.load %arg10[%c0_18, %c0_19] : memref<256x128xf32, #tpu.memory_space<vmem>>, vector<256x128xf32>
      %cst = arith.constant dense<0.000000e+00> : vector<256x128xf32>
      %44 = tpu.matmul %17, %42, %cst {dimension_numbers = #tpu.dot_dimension_numbers<[1], [0], [0], [1], [0, 0, 1, 1], [], []>} : vector<256x256xbf16>, vector<256x128xbf16>, vector<256x128xf32> -> vector<256x128xf32>
      %45 = arith.addf %43, %44 : vector<256x128xf32>
      %c0_20 = arith.constant 0 : index
      %c0_21 = arith.constant 0 : index
      %46 = vector.load %arg10[%c0_20, %c0_21] : memref<256x128xf32, #tpu.memory_space<vmem>>, vector<256x128xf32>
      tpu.vector_store %arg10[%c0_20, %c0_21], %45 {strides = array<i32>} : memref<256x128xf32, #tpu.memory_space<vmem>>, vector<256x128xf32>,
    } else {
    }
    %c0_i32_12 = arith.constant 0 : i32
    %27 = arith.cmpi eq, %arg0, %c0_i32_12 : i32
    %28 = arith.andi %0, %27 : i1
    %29 = arith.extui %28 : i1 to i32
    %c0_i32_13 = arith.constant 0 : i32
    %30 = arith.cmpi ne, %29, %c0_i32_13 : i32
    scf.if %30 {
      %c0 = arith.constant 0 : index
      %c0_17 = arith.constant 0 : index
      %c0_18 = arith.constant 0 : index
      %37 = vector.load %arg4[%c0, %c0_17, %c0_18] : memref<1x128x128xbf16, #tpu.memory_space<vmem>>, vector<1x1x128xbf16>
      %38 = vector.shape_cast %37 : vector<1x1x128xbf16> to vector<1x128xbf16>
      %39 = arith.extf %38 : vector<1x128xbf16> to vector<1x128xf32>
      %c0_19 = arith.constant 0 : index
      %c0_20 = arith.constant 0 : index
      %40 = vector.load %arg10[%c0_19, %c0_20] : memref<256x128xf32, #tpu.memory_space<vmem>>, vector<256x128xf32>
      %cst = arith.constant 1.000000e+00 : f32
      %41 = vector.broadcast %cst : f32 to vector<256x128xf32>
      %42 = arith.addf %40, %41 : vector<256x128xf32>
      %43 = vector.broadcast %39 : vector<1x128xf32> to vector<256x128xf32>
      %44 = arith.mulf %42, %43 : vector<256x128xf32>
      %c0_21 = arith.constant 0 : index
      %c0_22 = arith.constant 0 : index
      %c0_23 = arith.constant 0 : index
      %45 = vector.load %arg5[%c0_21, %c0_22, %c0_23] : memref<1x1x128xf32, #tpu.memory_space<vmem>>, vector<1x1x128xf32>
      %46 = vector.shape_cast %45 : vector<1x1x128xf32> to vector<1x128xf32>
      %47 = vector.broadcast %46 : vector<1x128xf32> to vector<256x128xf32>
      %48 = arith.addf %44, %47 : vector<256x128xf32>
      %c0_24 = arith.constant 0 : index
      %c0_25 = arith.constant 0 : index
      %49 = vector.load %arg10[%c0_24, %c0_25] : memref<256x128xf32, #tpu.memory_space<vmem>>, vector<256x128xf32>
      tpu.vector_store %arg10[%c0_24, %c0_25], %48 {strides = array<i32>} : memref<256x128xf32, #tpu.memory_space<vmem>>, vector<256x128xf32>,
    } else {
    }
    %c0_i32_14 = arith.constant 0 : i32
    %31 = arith.cmpi sgt, %arg0, %c0_i32_14 : i32
    %32 = arith.andi %0, %31 : i1
    %33 = arith.extui %32 : i1 to i32
    %c0_i32_15 = arith.constant 0 : i32
    %34 = arith.cmpi ne, %33, %c0_i32_15 : i32
    scf.if %34 {
      %c1_i32 = arith.constant 1 : i32
      %37 = arith.addi %arg0, %c1_i32 : i32
      %c1_i32_17 = arith.constant 1 : i32
      %38 = arith.andi %37, %c1_i32_17 : i32
      %39 = arith.index_cast %38 : i32 to index
      %40 = arith.index_cast %7 : i32 to index
      %c0 = arith.constant 0 : index
      %41 = vector.load %arg11[%39, %40, %c0] : memref<2x256x128xbf16, #tpu.memory_space<vmem>>, vector<1x256x128xbf16>
      %42 = vector.shape_cast %41 : vector<1x256x128xbf16> to vector<256x128xbf16>
      %43 = arith.extf %42 : vector<256x128xbf16> to vector<256x128xf32>
      %c0_18 = arith.constant 0 : index
      %c0_19 = arith.constant 0 : index
      %44 = vector.load %arg10[%c0_18, %c0_19] : memref<256x128xf32, #tpu.memory_space<vmem>>, vector<256x128xf32>
      %45 = arith.addf %44, %43 : vector<256x128xf32>
      %46 = arith.truncf %45 : vector<256x128xf32> to vector<256x128xbf16>
      %c0_20 = arith.constant 0 : index
      %c0_21 = arith.constant 0 : index
      %c0_22 = arith.constant 0 : index
      %47 = vector.load %arg4[%c0_20, %c0_21, %c0_22] : memref<1x128x128xbf16, #tpu.memory_space<vmem>>, vector<1x128x128xbf16>
      %48 = vector.shape_cast %47 : vector<1x128x128xbf16> to vector<128x128xbf16>
      %cst = arith.constant dense<0.000000e+00> : vector<256x128xf32>
      %49 = tpu.matmul %46, %48, %cst {dimension_numbers = #tpu.dot_dimension_numbers<[1], [0], [0], [1], [0, 0, 1, 1], [], []>} : vector<256x128xbf16>, vector<128x128xbf16>, vector<256x128xf32> -> vector<256x128xf32>
      %c0_23 = arith.constant 0 : index
      %c0_24 = arith.constant 0 : index
      %c0_25 = arith.constant 0 : index
      %50 = vector.load %arg5[%c0_23, %c0_24, %c0_25] : memref<1x1x128xf32, #tpu.memory_space<vmem>>, vector<1x1x128xf32>
      %51 = vector.shape_cast %50 : vector<1x1x128xf32> to vector<1x128xf32>
      %52 = vector.broadcast %51 : vector<1x128xf32> to vector<256x128xf32>
      %53 = arith.addf %49, %52 : vector<256x128xf32>
      %c0_26 = arith.constant 0 : index
      %c0_27 = arith.constant 0 : index
      %54 = vector.load %arg10[%c0_26, %c0_27] : memref<256x128xf32, #tpu.memory_space<vmem>>, vector<256x128xf32>
      tpu.vector_store %arg10[%c0_26, %c0_27], %53 {strides = array<i32>} : memref<256x128xf32, #tpu.memory_space<vmem>>, vector<256x128xf32>,
    } else {
    }
    %35 = arith.extui %0 : i1 to i32
    %c0_i32_16 = arith.constant 0 : i32
    %36 = arith.cmpi ne, %35, %c0_i32_16 : i32
    scf.if %36 {
      %c0 = arith.constant 0 : index
      %c0_17 = arith.constant 0 : index
      %37 = vector.load %arg10[%c0, %c0_17] : memref<256x128xf32, #tpu.memory_space<vmem>>, vector<256x128xf32>
      %cst = arith.constant 0.000000e+00 : f32
      %38 = vector.broadcast %cst : f32 to vector<256x128xf32>
      %39 = arith.maximumf %37, %38 : vector<256x128xf32>
      %40 = arith.truncf %39 : vector<256x128xf32> to vector<256x128xbf16>
      %c0_18 = arith.constant 0 : index
      %c0_19 = arith.constant 0 : index
      %c0_20 = arith.constant 0 : index
      %41 = vector.load %arg6[%c0_18, %c0_19, %c0_20] : memref<1x128x128xbf16, #tpu.memory_space<vmem>>, vector<1x128x128xbf16>
      %42 = vector.shape_cast %41 : vector<1x128x128xbf16> to vector<128x128xbf16>
      %cst_21 = arith.constant dense<0.000000e+00> : vector<256x128xf32>
      %43 = tpu.matmul %40, %42, %cst_21 {dimension_numbers = #tpu.dot_dimension_numbers<[1], [0], [0], [1], [0, 0, 1, 1], [], []>} : vector<256x128xbf16>, vector<128x128xbf16>, vector<256x128xf32> -> vector<256x128xf32>
      %c0_22 = arith.constant 0 : index
      %c0_23 = arith.constant 0 : index
      %c0_24 = arith.constant 0 : index
      %44 = vector.load %arg7[%c0_22, %c0_23, %c0_24] : memref<1x1x128xf32, #tpu.memory_space<vmem>>, vector<1x1x128xf32>
      %45 = vector.shape_cast %44 : vector<1x1x128xf32> to vector<1x128xf32>
      %46 = vector.broadcast %45 : vector<1x128xf32> to vector<256x128xf32>
      %47 = arith.addf %43, %46 : vector<256x128xf32>
      %cst_25 = arith.constant 0.000000e+00 : f32
      %48 = vector.broadcast %cst_25 : f32 to vector<256x128xf32>
      %49 = arith.maximumf %47, %48 : vector<256x128xf32>
      %50 = arith.truncf %49 : vector<256x128xf32> to vector<256x128xbf16>
      %c1_i32 = arith.constant 1 : i32
      %51 = arith.andi %arg0, %c1_i32 : i32
      %52 = arith.index_cast %51 : i32 to index
      %53 = arith.index_cast %7 : i32 to index
      %c0_26 = arith.constant 0 : index
      %54 = vector.load %arg11[%52, %53, %c0_26] : memref<2x256x128xbf16, #tpu.memory_space<vmem>>, vector<1x256x128xbf16>
      %55 = vector.shape_cast %54 : vector<1x256x128xbf16> to vector<256x128xbf16>
      %56 = vector.shape_cast %50 : vector<256x128xbf16> to vector<1x256x128xbf16>
      tpu.vector_store %arg11[%52, %53, %c0_26], %56 {strides = array<i32>} : memref<2x256x128xbf16, #tpu.memory_space<vmem>>, vector<1x256x128xbf16>,
      %c2_i32 = arith.constant 2 : i32
      %57 = arith.cmpi eq, %arg0, %c2_i32 : i32
      %58 = arith.extui %57 : i1 to i32
      %c0_i32_27 = arith.constant 0 : i32
      %59 = arith.cmpi ne, %58, %c0_i32_27 : i32
      scf.if %59 {
        %c0_28 = arith.constant 0 : index
        %60 = arith.index_cast %7 : i32 to index
        %61 = vector.load %arg8[%c0_28, %60] : memref<16x256xbf16, #tpu.memory_space<vmem>>, vector<16x256xbf16>
        %c0_29 = arith.constant 0 : index
        %c0_30 = arith.constant 0 : index
        %62 = vector.load %arg9[%c0_29, %c0_30] : memref<16x128xf32, #tpu.memory_space<vmem>>, vector<16x128xf32>
        %cst_31 = arith.constant dense<0.000000e+00> : vector<16x128xf32>
        %63 = tpu.matmul %61, %50, %cst_31 {dimension_numbers = #tpu.dot_dimension_numbers<[1], [0], [0], [1], [0, 0, 1, 1], [], []>} : vector<16x256xbf16>, vector<256x128xbf16>, vector<16x128xf32> -> vector<16x128xf32>
        %64 = arith.addf %62, %63 : vector<16x128xf32>
        %c0_32 = arith.constant 0 : index
        %c0_33 = arith.constant 0 : index
        %65 = vector.load %arg9[%c0_32, %c0_33] : memref<16x128xf32, #tpu.memory_space<vmem>>, vector<16x128xf32>
        tpu.vector_store %arg9[%c0_32, %c0_33], %64 {strides = array<i32>} : memref<16x128xf32, #tpu.memory_space<vmem>>, vector<16x128xf32>,
      } else {
      }
    } else {
    }
    return
  }
  func.func @transform_1(%arg0: i32, %arg1: i32, %arg2: i32) -> (i32, i32, i32) {
    %c0_i32 = arith.constant 0 : i32
    %c0_i32_0 = arith.constant 0 : i32
    %c0_i32_1 = arith.constant 0 : i32
    return %arg0, %c0_i32, %c0_i32_0 : i32, i32, i32
  }
  func.func @transform_2(%arg0: i32, %arg1: i32, %arg2: i32) -> (i32, i32, i32) {
    %c0_i32 = arith.constant 0 : i32
    %c0_i32_0 = arith.constant 0 : i32
    %c0_i32_1 = arith.constant 0 : i32
    return %arg0, %c0_i32, %c0_i32_0 : i32, i32, i32
  }
  func.func @transform_3(%arg0: i32, %arg1: i32, %arg2: i32) -> (i32, i32, i32) {
    %c0_i32 = arith.constant 0 : i32
    %c0_i32_0 = arith.constant 0 : i32
    %c0_i32_1 = arith.constant 0 : i32
    return %arg0, %c0_i32, %c0_i32_0 : i32, i32, i32
  }
  func.func @transform_4(%arg0: i32, %arg1: i32, %arg2: i32) -> (i32, i32, i32) {
    %c0_i32 = arith.constant 0 : i32
    %c0_i32_0 = arith.constant 0 : i32
    %c0_i32_1 = arith.constant 0 : i32
    return %arg0, %c0_i32, %c0_i32_0 : i32, i32, i32
  }
  func.func @transform_5(%arg0: i32, %arg1: i32, %arg2: i32) -> (i32, i32) {
    %c0_i32 = arith.constant 0 : i32
    %c0_i32_0 = arith.constant 0 : i32
    %c0_i32_1 = arith.constant 0 : i32
    return %c0_i32, %c0_i32_0 : i32, i32
  }
  func.func @transform_6(%arg0: i32, %arg1: i32, %arg2: i32) -> (i32, i32) {
    %c0_i32 = arith.constant 0 : i32
    %c0_i32_0 = arith.constant 0 : i32
    %c0_i32_1 = arith.constant 0 : i32
    return %c0_i32, %c0_i32_0 : i32, i32
  }
}

</mosaic_0001>

<bundles_post_ra>
// kernel: nested_gin_forward.1
= control target key start
LH: loop header
LB: loop body
LE: loop exit
PB: predicated region body
PF: predicated region fallthrough
CT: control target
= control target key end

     0   :  { %s2874_s21 = smov 0   ;;  %s2876_s22 = smov 0   ;;  %s3813_s0 = inlined_call_operand.vmem [shape: s8[256,256], index: 0, kind: input, shape index: {}]   ;;  %s3814_s1 = inlined_call_operand.vmem [shape: bf16[3,128,128], index: 1, kind: input, shape index: {}]   ;;  %s3815_s2 = inlined_call_operand.vmem [shape: f32[3,1,128], index: 2, kind: input, shape index: {}]   ;;  %s3816_s3 = inlined_call_operand.vmem [shape: bf16[3,128,128], index: 3, kind: input, shape index: {}]   ;;  %s3817_s4 = inlined_call_operand.vmem [shape: f32[3,1,128], index: 4, kind: input, shape index: {}]   ;;  %s3818_s5 = inlined_call_operand.vmem [shape: bf16[16,256], index: 5, kind: input, shape index: {}]   ;;  %s3819_s6 = inlined_call_operand.vmem [shape: f32[16,128], index: 6, kind: output, shape index: {}]  }
   0x1   :  { %s2878_s23 = smov 0  }
   0x2 LB: > { %s35_s24 = sadd.s32 1, %s2831_s22  ;;  %p2344_p0 = scmp.ge.s32.totalorder %s2835_s23, 1  ;;  %s2835_s23 = sphi %s2878_s23, %s16_s23   ;;  %s2831_s22 = sphi %s2876_s22, %s3884_s22   ;;  %s2827_s21 = sphi %s2874_s21, %s3883_s21  }
   0x3   : > { %p37_p1 = scmp.ge.s32.totalorder %s35_s24, 3  ;;  %p228_p2 = scmp.lt.s32.totalorder %s2835_s23, 4 }
   0x5   : > { %s3886_s24 = smov (%p37_p1, %s35_s24), 0  ;;  %p229_p3 = pnand %p2344_p0, %p228_p2 }
   0x7   : > { %232 = sbr.rel (%p229_p3) target bundleno = 1283 (0x503), region = 40 }
   0xc   : > { %p262_p4 = scmp.lt.s32.totalorder %s2827_s21, 2  ;;  %p279_p5 = scmp.eq.s32.totalorder %s2827_s21, 0 }
   0xd   : > { %v301_v0 = vld [vmem:[%s3813_s0] sm:$0xff] (%p279_p5)  ;;  %v2837_v1 = vmov (%p279_p5), 0.0   ;;  %v303_v2 = vld [vmem:[%s3813_s0 + $0x8] sm:$0xff] (%p279_p5)  ;;  %v305_v3 = vld [vmem:[%s3813_s0 + $0x10] sm:$0xff] (%p279_p5) }
   0xe   : > { %s2897_s25 = scalar_select %p262_p4, %s2827_s21, 2  ;;  %289 = vst [vmem:[%s3819_s6] sm:$0xff] (%p279_p5), %v2837_v1  ;;  %v307_v4 = vld [vmem:[%s3813_s0 + $0x18] sm:$0xff] (%p279_p5)  ;;  %v309_v5 = vld [vmem:[%s3813_s0 + $0x20] sm:$0xff] (%p279_p5)  ;;  %v311_v6 = vld [vmem:[%s3813_s0 + $0x28] sm:$0xff] (%p279_p5) }
   0xf   : > { %288 = sbr.rel (!%p279_p5) target bundleno = 35 (0x23), region = 44  ;;  %290 = vst [vmem:[%s3819_s6 + $0x8] sm:$0xff] (%p279_p5), %v2837_v1  ;;  %v313_v7 = vld [vmem:[%s3813_s0 + $0x30] sm:$0xff] (%p279_p5)  ;;  %v315_v8 = vld [vmem:[%s3813_s0 + $0x38] sm:$0xff] (%p279_p5)  ;;  %v317_v9 = vld [vmem:[%s3813_s0 + $0x40] sm:$0xff] (%p279_p5) }
  0x10   : > { %s2501_s26 = sshll.u32 %s2897_s25, 6  ;;  %s2904_s29 = scalar_lea.vmem %s3815_s2, %s2897_s25  ;;  %302 = vst [vmem:[#allocation4] sm:$0xff] (%p279_p5), %v301_v0  ;;  %v319_v10 = vld [vmem:[%s3813_s0 + $0x48] sm:$0xff] (%p279_p5)  ;;  %v321_v11 = vld [vmem:[%s3813_s0 + $0x50] sm:$0xff] (%p279_p5)  ;;  %v323_v12 = vld [vmem:[%s3813_s0 + $0x58] sm:$0xff] (%p279_p5) }
  0x11   : > { %s2909_s8 = scalar_lea.vmem %s3814_s1, %s2501_s26  ;;  %s2914_s11 = scalar_lea.vmem %s3816_s3, %s2501_s26  ;;  %304 = vst [vmem:[#allocation4 + $0x48] sm:$0xff] (%p279_p5), %v303_v2  ;;  %v325_v13 = vld [vmem:[%s3813_s0 + $0x60] sm:$0xff] (%p279_p5)  ;;  %v327_v14 = vld [vmem:[%s3813_s0 + $0x68] sm:$0xff] (%p279_p5)  ;;  %v329_v15 = vld [vmem:[%s3813_s0 + $0x70] sm:$0xff] (%p279_p5) }
  0x12   : > { %s277_s14 = scalar_lea.vmem %s3817_s4, %s2897_s25  ;;  %306 = vst [vmem:[#allocation4 + $0x68] sm:$0xff] (%p279_p5), %v305_v3  ;;  %v331_v16 = vld [vmem:[%s3813_s0 + $0x78] sm:$0xff] (%p279_p5) }
  0x13   : > { %308 = vst [vmem:[#allocation4 + $0x78] sm:$0xff] (%p279_p5), %v307_v4 }
  0x14   : > { %310 = vst [vmem:[#allocation4 + $0x8] sm:$0xff] %v309_v5 }
  0x15   : > { %312 = vst [vmem:[#allocation4 + $0x50] sm:$0xff] %v311_v6 }
  0x16   : > { %314 = vst [vmem:[#allocation4 + $0x40] sm:$0xff] %v313_v7 }
  0x17   : > { %316 = vst [vmem:[#allocation4 + $0x38] sm:$0xff] %v315_v8 }
  0x18   : > { %318 = vst [vmem:[#allocation4 + $0x70] sm:$0xff] %v317_v9 }
  0x19   : > { %320 = vst [vmem:[#allocation4 + $0x60] sm:$0xff] %v319_v10 }
  0x1a   : > { %322 = vst [vmem:[#allocation4 + $0x18] sm:$0xff] %v321_v11 }
  0x1b   : > { %324 = vst [vmem:[#allocation4 + $0x20] sm:$0xff] %v323_v12 }
  0x1c   : > { %326 = vst [vmem:[#allocation4 + $0x10] sm:$0xff] %v325_v13 }
  0x1d   : > { %328 = vst [vmem:[#allocation4 + $0x30] sm:$0xff] %v327_v14 }
  0x1e   : > { %330 = vst [vmem:[#allocation4 + $0x28] sm:$0xff] %v329_v15 }
  0x1f   : > { %332 = vst [vmem:[#allocation4 + $0x58] sm:$0xff] %v331_v16 }
  0x20   : > { %338 = vsyncadd [#allocation5], 2048 }
  0x21   : > { %2823 = dma.done.wait [#allocation5], 2048 }
  0x22   : > { %2824 = vsyncadd [#allocation5], 4294965248 }
  0x23 PF: > { %v2990_v26 = vld [vmem:[#allocation4 + $0x50] sm:$0xff]  ;;  %v3000_v35 = vld [vmem:[#allocation4 + $0x40] sm:$0xff]  ;;  %v3002_v36 = vld [vmem:[#allocation4 + $0x38] sm:$0xff]  ;;  %p2351_p6 = scmp.ne.s32.totalorder %s2827_s21, 0 }
  0x24   : > { %v384_v42 = vunpack.c.0.s8 %v2990_v26  ;;  %v386_v44 = vunpack.c.1.s8 %v2990_v26  ;;  %v3012_v45 = vld [vmem:[#allocation4 + $0x70] sm:$0xff]  ;;  %v3014_v46 = vld [vmem:[#allocation4 + $0x60] sm:$0xff]  ;;  %v388_v48 = vunpack.c.2.s8 %v2990_v26  ;;  %v390_v50 = vunpack.c.3.s8 %v2990_v26  ;;  %v3024_v55 = vld [vmem:[#allocation4 + $0x18] sm:$0xff] }
  0x25   : > { %v391_v51 = vunpack.c.0.s8 %v3000_v35  ;;  %v392_v52 = vunpack.c.0.s8 %v3002_v36  ;;  %v393_v53 = vunpack.c.1.s8 %v3000_v35  ;;  %v394_v54 = vunpack.c.1.s8 %v3002_v36  ;;  %v3026_v56 = vld [vmem:[#allocation4 + $0x20] sm:$0xff]  ;;  %v3036_v1 = vld [vmem:[#allocation4 + $0x10] sm:$0xff]  ;;  %v3048_v11 = vld [vmem:[#allocation4 + $0x28] sm:$0xff] }
  0x26   : > { %v2976_v17 = vld [vmem:[#allocation4] sm:$0xff]  ;;  %v395_v57 = vunpack.c.2.s8 %v3000_v35  ;;  %v396_v58 = vunpack.c.2.s8 %v3002_v36  ;;  %v397_v59 = vunpack.c.3.s8 %v3000_v35  ;;  %v398_v60 = vunpack.c.3.s8 %v3002_v36  ;;  %v3038_v2 = vld [vmem:[#allocation4 + $0x30] sm:$0xff]  ;;  %v3050_v12 = vld [vmem:[#allocation4 + $0x58] sm:$0xff] }
  0x27   : > { %v2978_v18 = vld [vmem:[#allocation4 + $0x48] sm:$0xff]  ;;  %v367_v21 = vunpack.c.0.s8 %v2976_v17  ;;  %v369_v23 = vunpack.c.1.s8 %v2976_v17  ;;  %v371_v27 = vunpack.c.2.s8 %v2976_v17  ;;  %v373_v29 = vunpack.c.3.s8 %v2976_v17  ;;  %3828 = vst [vmem:[#allocation8_spill] sm:$0xff] %v3050_v12 }
  0x28   : > { %v2980_v19 = vld [vmem:[#allocation4 + $0x68] sm:$0xff]  ;;  %v368_v22 = vunpack.c.0.s8 %v2978_v18  ;;  %v370_v24 = vunpack.c.1.s8 %v2978_v18  ;;  %v372_v28 = vunpack.c.2.s8 %v2978_v18  ;;  %v374_v30 = vunpack.c.3.s8 %v2978_v18 }
  0x29   : > { %v2982_v20 = vld [vmem:[#allocation4 + $0x78] sm:$0xff]  ;;  %v375_v31 = vunpack.c.0.s8 %v2980_v19  ;;  %v377_v33 = vunpack.c.1.s8 %v2980_v19  ;;  %v379_v37 = vunpack.c.2.s8 %v2980_v19  ;;  %v381_v39 = vunpack.c.3.s8 %v2980_v19 }
  0x2a   : > { %v2988_v25 = vld [vmem:[#allocation4 + $0x8] sm:$0xff]  ;;  %v376_v32 = vunpack.c.0.s8 %v2982_v20  ;;  %v378_v34 = vunpack.c.1.s8 %v2982_v20  ;;  %v380_v38 = vunpack.c.2.s8 %v2982_v20  ;;  %v382_v40 = vunpack.c.3.s8 %v2982_v20 }
  0x2b   : > { %v383_v41 = vunpack.c.0.s8 %v2988_v25  ;;  %v385_v43 = vunpack.c.1.s8 %v2988_v25  ;;  %v387_v47 = vunpack.c.2.s8 %v2988_v25  ;;  %v389_v49 = vunpack.c.3.s8 %v2988_v25 }
  0x2c   : > { %v399_v61 = vunpack.c.0.s8 %v3012_v45  ;;  %v400_v62 = vunpack.c.0.s8 %v3014_v46  ;;  %v401_v63 = vunpack.c.1.s8 %v3012_v45  ;;  %v402_v0 = vunpack.c.1.s8 %v3014_v46 }
  0x2d   : > { %v403_v3 = vunpack.c.2.s8 %v3012_v45  ;;  %v404_v4 = vunpack.c.2.s8 %v3014_v46  ;;  %v3074_v13 = vcvt.s32.f32 %v367_v21  ;;  %v3078_v15 = vcvt.s32.f32 %v368_v22 }
  0x2e   : > { %v433_v7 = vcvt.s32.f32 %v369_v23  ;;  %v434_v9 = vcvt.s32.f32 %v370_v24  ;;  %v435_v10 = vcvt.s32.f32 %v371_v27  ;;  %v436_v5 = vcvt.s32.f32 %v372_v28 }
  0x2f   : > { %3829 = vst [vmem:[#allocation9_spill] sm:$0xff] %v3074_v13  ;;  %v437_v21 = vcvt.s32.f32 %v373_v29  ;;  %v438_v6 = vcvt.s32.f32 %v374_v30  ;;  %v439_v22 = vcvt.s32.f32 %v375_v31  ;;  %v440_v23 = vcvt.s32.f32 %v376_v32 }
  0x30   : > { %3830 = vst [vmem:[#allocation10_spill] sm:$0xff] %v3078_v15  ;;  %v441_v24 = vcvt.s32.f32 %v377_v33  ;;  %v442_v27 = vcvt.s32.f32 %v378_v34  ;;  %v443_v28 = vcvt.s32.f32 %v379_v37  ;;  %v444_v17 = vcvt.s32.f32 %v380_v38 }
  0x31   : > { %v445_v18 = vcvt.s32.f32 %v381_v39  ;;  %v446_v29 = vcvt.s32.f32 %v382_v40  ;;  %v447_v30 = vcvt.s32.f32 %v383_v41  ;;  %v448_v31 = vcvt.s32.f32 %v384_v42 }
  0x32   : > { %v449_v32 = vcvt.s32.f32 %v385_v43  ;;  %v450_v33 = vcvt.s32.f32 %v386_v44  ;;  %v451_v34 = vcvt.s32.f32 %v387_v47  ;;  %v452_v19 = vcvt.s32.f32 %v388_v48 }
  0x33   : > { %v453_v20 = vcvt.s32.f32 %v389_v49  ;;  %v454_v37 = vcvt.s32.f32 %v390_v50  ;;  %v455_v38 = vcvt.s32.f32 %v391_v51  ;;  %v456_v39 = vcvt.s32.f32 %v392_v52 }
  0x34   : > { %v457_v40 = vcvt.s32.f32 %v393_v53  ;;  %v458_v41 = vcvt.s32.f32 %v394_v54  ;;  %v459_v42 = vcvt.s32.f32 %v395_v57  ;;  %v460_v25 = vcvt.s32.f32 %v396_v58 }
  0x35   : > { %v461_v26 = vcvt.s32.f32 %v397_v59  ;;  %v462_v43 = vcvt.s32.f32 %v398_v60  ;;  %v463_v44 = vcvt.s32.f32 %v399_v61  ;;  %v464_v47 = vcvt.s32.f32 %v400_v62 }
  0x36   : > { %v465_v48 = vcvt.s32.f32 %v401_v63  ;;  %v466_v49 = vcvt.s32.f32 %v402_v0  ;;  %v467_v50 = vcvt.s32.f32 %v403_v3  ;;  %v468_v35 = vcvt.s32.f32 %v404_v4 }
  0x37   : > { %v3831_v36 = vunpack.c.3.s8 %v3012_v45  ;;  %v3832_v52 = vunpack.c.3.s8 %v3014_v46  ;;  %v3833_v54 = vunpack.c.0.s8 %v3024_v55  ;;  %v3834_v58 = vunpack.c.0.s8 %v3026_v56 }
  0x38   : > { %v3835_v60 = vunpack.c.1.s8 %v3024_v55  ;;  %v3836_v62 = vunpack.c.1.s8 %v3026_v56  ;;  %v3837_v0 = vunpack.c.2.s8 %v3024_v55  ;;  %v3838_v45 = vunpack.c.2.s8 %v3026_v56 }
  0x39   : > { %v469_v51 = vcvt.s32.f32 %v3831_v36  ;;  %v470_v53 = vcvt.s32.f32 %v3832_v52  ;;  %v471_v57 = vcvt.s32.f32 %v3833_v54  ;;  %v472_v59 = vcvt.s32.f32 %v3834_v58 }
  0x3a   : > { %v473_v61 = vcvt.s32.f32 %v3835_v60  ;;  %v474_v63 = vcvt.s32.f32 %v3836_v62  ;;  %v475_v3 = vcvt.s32.f32 %v3837_v0  ;;  %v476_v4 = vcvt.s32.f32 %v3838_v45 }
  0x3b   : > { %v3839_v46 = vunpack.c.3.s8 %v3024_v55  ;;  %v3840_v52 = vunpack.c.3.s8 %v3026_v56  ;;  %v3841_v58 = vunpack.c.0.s8 %v3036_v1  ;;  %v3842_v60 = vunpack.c.0.s8 %v3038_v2 }
  0x3c   : > { %v3843_v62 = vunpack.c.1.s8 %v3036_v1  ;;  %v3844_v0 = vunpack.c.1.s8 %v3038_v2  ;;  %v3845_v45 = vunpack.c.2.s8 %v3036_v1  ;;  %v3846_v55 = vunpack.c.2.s8 %v3038_v2 }
  0x3d   : > { %v477_v36 = vcvt.s32.f32 %v3839_v46  ;;  %v478_v54 = vcvt.s32.f32 %v3840_v52  ;;  %v479_v8 = vcvt.s32.f32 %v3841_v58  ;;  %v480_v16 = vcvt.s32.f32 %v3842_v60 }
  0x3e   : > { %v481_v14 = vcvt.s32.f32 %v3843_v62  ;;  %v482_v15 = vcvt.s32.f32 %v3844_v0  ;;  %v483_v13 = vcvt.s32.f32 %v3845_v45  ;;  %v484_v46 = vcvt.s32.f32 %v3846_v55  ;;  %v3850_v0 = vld [vmem:[#allocation8_spill] sm:$0xff] }
  0x3f   : > { %v3847_v56 = vunpack.c.3.s8 %v3036_v1  ;;  %v3848_v58 = vunpack.c.3.s8 %v3038_v2  ;;  %v3849_v60 = vunpack.c.0.s8 %v3048_v11  ;;  %v3851_v45 = vunpack.c.0.s8 %v3850_v0 }
  0x40   : > { %v3852_v1 = vunpack.c.1.s8 %v3048_v11  ;;  %v3853_v2 = vunpack.c.1.s8 %v3850_v0 }
  0x41   : > { %v485_v52 = vcvt.s32.f32 %v3847_v56  ;;  %v486_v12 = vcvt.s32.f32 %v3848_v58  ;;  %v487_v62 = vcvt.s32.f32 %v3849_v60  ;;  %v488_v55 = vcvt.s32.f32 %v3851_v45 }
  0x42   : > { %v489_v56 = vcvt.s32.f32 %v3852_v1  ;;  %v490_v58 = vcvt.s32.f32 %v3853_v2  ;;  %v3854_v60 = vunpack.c.2.s8 %v3048_v11  ;;  %v3855_v1 = vunpack.c.2.s8 %v3850_v0 }
  0x44   : > { %v491_v45 = vcvt.s32.f32 %v3854_v60  ;;  %v492_v2 = vcvt.s32.f32 %v3855_v1  ;;  %v3856_v60 = vunpack.c.3.s8 %v3048_v11  ;;  %v3857_v1 = vld [vmem:[#allocation8_spill] sm:$0xff] }
  0x45   : > { %v3858_v11 = vunpack.c.3.s8 %v3857_v1  ;;  %v3859_v1 = vld [vmem:[#allocation9_spill] sm:$0xff] }
  0x46   : > { %v493_v0 = vcvt.s32.f32 %v3856_v60 }
  0x47   : > { %v494_v60 = vcvt.s32.f32 %v3858_v11  ;;  %v3205_v11 = vpack.c.bf16 %v433_v7, %v3859_v1  ;;  %v3861_v1 = vld [vmem:[#allocation10_spill] sm:$0xff] }
  0x48   : > { %v3208_v7 = vpack.c.bf16 %v434_v9, %v3861_v1  ;;  %v3212_v1 = vpack.c.bf16 %v438_v6, %v436_v5  ;;  %v3214_v9 = vpack.c.bf16 %v441_v24, %v439_v22  ;;  %v3224_v5 = vpack.c.bf16 %v450_v33, %v448_v31 }
  0x49   : > { %3860 = vst [vmem:[#allocation8_spill] sm:$0xff] %v3205_v11  ;;  %v3210_v11 = vpack.c.bf16 %v437_v21, %v435_v10  ;;  %v3218_v10 = vpack.c.bf16 %v445_v18, %v443_v28  ;;  %v3220_v21 = vpack.c.bf16 %v446_v29, %v444_v17  ;;  %v3226_v6 = vpack.c.bf16 %v453_v20, %v451_v34 }
  0x4a   : > { %3862 = vst [vmem:[#allocation9_spill] sm:$0xff] %v3208_v7  ;;  %v3216_v7 = vpack.c.bf16 %v442_v27, %v440_v23  ;;  %v3230_v22 = vpack.c.bf16 %v457_v40, %v455_v38  ;;  %v3232_v24 = vpack.c.bf16 %v458_v41, %v456_v39  ;;  %v3236_v23 = vpack.c.bf16 %v462_v43, %v460_v25 }
  0x4b   : > { %3863 = vst [vmem:[#allocation10_spill] sm:$0xff] %v3210_v11  ;;  %v3222_v11 = vpack.c.bf16 %v449_v32, %v447_v30  ;;  %v3238_v27 = vpack.c.bf16 %v465_v48, %v463_v44  ;;  %v3240_v28 = vpack.c.bf16 %v466_v49, %v464_v47  ;;  %v3242_v17 = vpack.c.bf16 %v469_v51, %v467_v50 }
  0x4c   : > { %3864 = vst [vmem:[#allocation11_spill] sm:$0xff] %v3212_v1  ;;  %v3228_v1 = vpack.c.bf16 %v454_v37, %v452_v19  ;;  %v3244_v18 = vpack.c.bf16 %v470_v53, %v468_v35  ;;  %v3246_v29 = vpack.c.bf16 %v473_v61, %v471_v57  ;;  %v3248_v30 = vpack.c.bf16 %v474_v63, %v472_v59 }
  0x4d   : > { %3865 = vst [vmem:[#allocation12_spill] sm:$0xff] %v3214_v9  ;;  %v3234_v9 = vpack.c.bf16 %v461_v26, %v459_v42  ;;  %v3250_v31 = vpack.c.bf16 %v477_v36, %v475_v3  ;;  %v3252_v32 = vpack.c.bf16 %v478_v54, %v476_v4  ;;  %v3254_v33 = vpack.c.bf16 %v481_v14, %v479_v8 }
  0x4e   : > { %v3256_v34 = vpack.c.bf16 %v482_v15, %v480_v16  ;;  %v3258_v19 = vpack.c.bf16 %v485_v52, %v483_v13  ;;  %v3260_v20 = vpack.c.bf16 %v486_v12, %v484_v46  ;;  %v3262_v37 = vpack.c.bf16 %v489_v56, %v487_v62 }
  0x4f   : > { %v3264_v38 = vpack.c.bf16 %v490_v58, %v488_v55  ;;  %v3266_v39 = vpack.c.bf16 %v493_v0, %v491_v45  ;;  %v3268_v40 = vpack.c.bf16 %v494_v60, %v492_v2  ;;  %v2838_v41 = vmov 0.0  }
  0x50   : > { %530 = vst [vmem:[#allocation2 + $0xb0] sm:$0xff] %v2838_v41 }
  0x51   : > { %531 = vst [vmem:[#allocation2] sm:$0xff] %v2838_v41 }
  0x52   : > { %532 = vst [vmem:[#allocation2 + $0xd8] sm:$0xff] %v2838_v41 }
  0x53   : > { %533 = vst [vmem:[#allocation2 + $0x18] sm:$0xff] %v2838_v41 }
  0x54   : > { %534 = vst [vmem:[#allocation2 + $0x50] sm:$0xff] %v2838_v41 }
  0x55   : > { %535 = vst [vmem:[#allocation2 + $0x68] sm:$0xff] %v2838_v41 }
  0x56   : > { %536 = vst [vmem:[#allocation2 + $0x30] sm:$0xff] %v2838_v41 }
  0x57   : > { %537 = vst [vmem:[#allocation2 + $0x48] sm:$0xff] %v2838_v41 }
  0x58   : > { %538 = vst [vmem:[#allocation2 + $0x80] sm:$0xff] %v2838_v41 }
  0x59   : > { %539 = vst [vmem:[#allocation2 + $0x88] sm:$0xff] %v2838_v41 }
  0x5a   : > { %540 = vst [vmem:[#allocation2 + $0xe8] sm:$0xff] %v2838_v41 }
  0x5b   : > { %541 = vst [vmem:[#allocation2 + $0xb8] sm:$0xff] %v2838_v41 }
  0x5c   : > { %542 = vst [vmem:[#allocation2 + $0x60] sm:$0xff] %v2838_v41 }
  0x5d   : > { %543 = vst [vmem:[#allocation2 + $0xf0] sm:$0xff] %v2838_v41 }
  0x5e   : > { %544 = vst [vmem:[#allocation2 + $0x8] sm:$0xff] %v2838_v41 }
  0x5f   : > { %545 = vst [vmem:[#allocation2 + $0x78] sm:$0xff] %v2838_v41 }
  0x60   : > { %546 = vst [vmem:[#allocation2 + $0x38] sm:$0xff] %v2838_v41 }
  0x61   : > { %547 = vst [vmem:[#allocation2 + $0x58] sm:$0xff] %v2838_v41 }
  0x62   : > { %548 = vst [vmem:[#allocation2 + $0x40] sm:$0xff] %v2838_v41 }
  0x63   : > { %549 = vst [vmem:[#allocation2 + $0xc8] sm:$0xff] %v2838_v41 }
  0x64   : > { %550 = vst [vmem:[#allocation2 + $0xe0] sm:$0xff] %v2838_v41 }
  0x65   : > { %551 = vst [vmem:[#allocation2 + $0x90] sm:$0xff] %v2838_v41 }
  0x66   : > { %552 = vst [vmem:[#allocation2 + $0x70] sm:$0xff] %v2838_v41 }
  0x67   : > { %553 = vst [vmem:[#allocation2 + $0xc0] sm:$0xff] %v2838_v41 }
  0x68   : > { %554 = vst [vmem:[#allocation2 + $0xa8] sm:$0xff] %v2838_v41 }
  0x69   : > { %555 = vst [vmem:[#allocation2 + $0xd0] sm:$0xff] %v2838_v41 }
  0x6a   : > { %556 = vst [vmem:[#allocation2 + $0x10] sm:$0xff] %v2838_v41 }
  0x6b   : > { %557 = vst [vmem:[#allocation2 + $0x28] sm:$0xff] %v2838_v41  ;;  %564 = sbr.rel (%p2351_p6) target bundleno = 317 (0x13d), region = 71 }
  0x6c   : > { %558 = vst [vmem:[#allocation2 + $0xa0] sm:$0xff] %v2838_v41 }
  0x6d   : > { %559 = vst [vmem:[#allocation2 + $0xf8] sm:$0xff] %v2838_v41 }
  0x6e   : > { %560 = vst [vmem:[#allocation2 + $0x20] sm:$0xff] %v2838_v41 }
  0x6f   : > { %561 = vst [vmem:[#allocation2 + $0x98] sm:$0xff] %v2838_v41 }
  0x70   : > { %v3866_v8 = vld [vmem:[#allocation10_spill] sm:$0xff]  ;;  %v3867_v13 = vld [vmem:[#allocation11_spill] sm:$0xff]  ;;  %v3868_v15 = vld [vmem:[#allocation8_spill] sm:$0xff]  ;;  %v574_v44 = vunpack.c.l.bf16 %v3216_v7  ;;  %v576_v59 = vunpack.c.h.bf16 %v3216_v7  ;;  %v579_v4 = vunpack.c.h.bf16 %v3218_v10  ;;  %v580_v36 = vunpack.c.h.bf16 %v3220_v21 }
  0x71   : > { %v569_v12 = vunpack.c.l.bf16 %v3866_v8  ;;  %v570_v14 = vunpack.c.l.bf16 %v3867_v13  ;;  %v565_v16 = vunpack.c.l.bf16 %v3868_v15  ;;  %v3869_v42 = vld [vmem:[#allocation9_spill] sm:$0xff]  ;;  %v3870_v26 = vld [vmem:[#allocation12_spill] sm:$0xff]  ;;  %v571_v50 = vunpack.c.h.bf16 %v3866_v8 }
  0x72   : > { %v566_v25 = vunpack.c.l.bf16 %v3869_v42  ;;  %v573_v43 = vunpack.c.l.bf16 %v3870_v26  ;;  %v572_v35 = vunpack.c.h.bf16 %v3867_v13  ;;  %v567_v51 = vunpack.c.h.bf16 %v3868_v15 }
  0x73   : > { %v635_v47 = vadd.f32 %v570_v14, %v569_v12  ;;  %v568_v53 = vunpack.c.h.bf16 %v3869_v42  ;;  %v575_v57 = vunpack.c.h.bf16 %v3870_v26  ;;  %v577_v54 = vunpack.c.l.bf16 %v3218_v10 }
  0x74   : > { %v629_v48 = vadd.f32 %v566_v25, %v565_v16  ;;  %v641_v49 = vadd.f32 %v574_v44, %v573_v43  ;;  %v638_v61 = vadd.f32 %v572_v35, %v571_v50  ;;  %v578_v46 = vunpack.c.l.bf16 %v3220_v21 }
  0x75   : > { %636 = vadd.xlane.f32.xlu1 %v635_v47  ;;  %v632_v63 = vadd.f32 %v568_v53, %v567_v51  ;;  %v644_v3 = vadd.f32 %v576_v59, %v575_v57  ;;  %v581_v52 = vunpack.c.l.bf16 %v3222_v11  ;;  %v582_v62 = vunpack.c.l.bf16 %v3224_v5 }
  0x76   : > { %630 = vadd.xlane.f32.xlu0 %v629_v48  ;;  %642 = vadd.xlane.f32.xlu2 %v641_v49  ;;  %v650_v0 = vadd.f32 %v580_v36, %v579_v4  ;;  %v647_v55 = vadd.f32 %v578_v46, %v577_v54  ;;  %v585_v58 = vunpack.c.l.bf16 %v3226_v6  ;;  %v586_v45 = vunpack.c.l.bf16 %v3228_v1 }
  0x77   : > { %v653_v56 = vadd.f32 %v582_v62, %v581_v52  ;;  %v583_v2 = vunpack.c.h.bf16 %v3222_v11  ;;  %v584_v60 = vunpack.c.h.bf16 %v3224_v5  ;;  %v587_v41 = vunpack.c.h.bf16 %v3226_v6 }
  0x78   : > { %v588_v8 = vunpack.c.h.bf16 %v3228_v1  ;;  %v659_v12 = vadd.f32 %v586_v45, %v585_v58  ;;  %v591_v15 = vunpack.c.h.bf16 %v3230_v22  ;;  %v592_v16 = vunpack.c.h.bf16 %v3232_v24 }
  0x79   : > { %v656_v13 = vadd.f32 %v584_v60, %v583_v2  ;;  %v589_v42 = vunpack.c.l.bf16 %v3230_v22  ;;  %v590_v25 = vunpack.c.l.bf16 %v3232_v24  ;;  %v593_v26 = vunpack.c.l.bf16 %v3234_v9 }
  0x7a   : > { %v662_v14 = vadd.f32 %v588_v8, %v587_v41  ;;  %v594_v43 = vunpack.c.l.bf16 %v3236_v23  ;;  %v668_v44 = vadd.f32 %v592_v16, %v591_v15  ;;  %v597_v49 = vunpack.c.l.bf16 %v3238_v27 }
  0x7b   : > { %v665_v47 = vadd.f32 %v590_v25, %v589_v42  ;;  %v598_v50 = vunpack.c.l.bf16 %v3240_v28  ;;  %v595_v35 = vunpack.c.h.bf16 %v3234_v9  ;;  %v596_v51 = vunpack.c.h.bf16 %v3236_v23 }
  0x7c   : > { %v671_v48 = vadd.f32 %v594_v43, %v593_v26  ;;  %v599_v53 = vunpack.c.h.bf16 %v3238_v27  ;;  %v600_v57 = vunpack.c.h.bf16 %v3240_v28  ;;  %v604_v4 = vunpack.c.h.bf16 %v3244_v18 }
  0x7d   : > { %639 = vadd.xlane.f32.xlu1 %v638_v61  ;;  %v677_v59 = vadd.f32 %v598_v50, %v597_v49  ;;  %v674_v61 = vadd.f32 %v596_v51, %v595_v35  ;;  %v601_v36 = vunpack.c.l.bf16 %v3242_v17  ;;  %v602_v54 = vunpack.c.l.bf16 %v3244_v18 }
  0x7e   : > { %633 = vadd.xlane.f32.xlu0 %v632_v63  ;;  %645 = vadd.xlane.f32.xlu2 %v644_v3  ;;  %v680_v63 = vadd.f32 %v600_v57, %v599_v53  ;;  %v603_v3 = vunpack.c.h.bf16 %v3242_v17  ;;  %v605_v46 = vunpack.c.l.bf16 %v3246_v29  ;;  %v606_v52 = vunpack.c.l.bf16 %v3248_v30 }
  0x7f   : > { %v610_v58 = vunpack.c.l.bf16 %v3252_v32  ;;  %v607_v45 = vunpack.c.h.bf16 %v3246_v29  ;;  %v608_v2 = vunpack.c.h.bf16 %v3248_v30  ;;  %v611_v60 = vunpack.c.h.bf16 %v3250_v31 }
  0x80   : > { %v686_v62 = vadd.f32 %v604_v4, %v603_v3  ;;  %v612_v41 = vunpack.c.h.bf16 %v3252_v32  ;;  %v616_v15 = vunpack.c.h.bf16 %v3256_v34  ;;  %v613_v16 = vunpack.c.l.bf16 %v3254_v33 }
  0x81   : > { %v614_v42 = vunpack.c.l.bf16 %v3256_v34  ;;  %v617_v25 = vunpack.c.l.bf16 %v3258_v19  ;;  %v618_v26 = vunpack.c.l.bf16 %v3260_v20  ;;  %v622_v49 = vunpack.c.l.bf16 %v3264_v38 }
  0x82   : > { %v619_v50 = vunpack.c.h.bf16 %v3258_v19  ;;  %v620_v35 = vunpack.c.h.bf16 %v3260_v20  ;;  %v623_v51 = vunpack.c.h.bf16 %v3262_v37  ;;  %v624_v53 = vunpack.c.h.bf16 %v3264_v38 }
  0x83   : > { %v628_v3 = vunpack.c.h.bf16 %v3268_v40  ;;  %v625_v4 = vunpack.c.l.bf16 %v3266_v39 }
  0x85   : > { %651 = vadd.xlane.f32.xlu1 %v650_v0  ;;  %v683_v0 = vadd.f32 %v602_v54, %v601_v36  ;;  %v626_v36 = vunpack.c.l.bf16 %v3268_v40 }
  0x86   : > { %648 = vadd.xlane.f32.xlu0 %v647_v55  ;;  %654 = vadd.xlane.f32.xlu2 %v653_v56  ;;  %v689_v55 = vadd.f32 %v606_v52, %v605_v46  ;;  %v609_v56 = vunpack.c.l.bf16 %v3250_v31  ;;  %v727_v52 = vld [vmem:[#allocation2 + $0xd8] sm:$0xff] }
  0x87   : > { %v719_v46 = vadd.f32 %v626_v36, %v625_v4 }
  0x88   : > { %v695_v8 = vadd.f32 %v610_v58, %v609_v56 }
  0x8d   : > { %660 = vadd.xlane.f32.xlu1 %v659_v12  ;;  %v692_v12 = vadd.f32 %v608_v2, %v607_v45 }
  0x8e   : > { %657 = vadd.xlane.f32.xlu0 %v656_v13  ;;  %663 = vadd.xlane.f32.xlu2 %v662_v14  ;;  %v698_v13 = vadd.f32 %v612_v41, %v611_v60  ;;  %v615_v14 = vunpack.c.h.bf16 %v3254_v33  ;;  %v728_v41 = vld [vmem:[#allocation2 + $0x18] sm:$0xff] }
  0x90   : > { %v704_v43 = vadd.f32 %v616_v15, %v615_v14 }
  0x95   : > { %669 = vadd.xlane.f32.xlu1 %v668_v44  ;;  %v701_v44 = vadd.f32 %v614_v42, %v613_v16 }
  0x96   : > { %666 = vadd.xlane.f32.xlu0 %v665_v47  ;;  %672 = vadd.xlane.f32.xlu2 %v671_v48  ;;  %v707_v47 = vadd.f32 %v618_v26, %v617_v25  ;;  %v621_v48 = vunpack.c.l.bf16 %v3262_v37  ;;  %v732_v26 = vld [vmem:[#allocation2 + $0x48] sm:$0xff] }
  0x98   : > { %v713_v57 = vadd.f32 %v622_v49, %v621_v48 }
  0x9d   : > { %678 = vadd.xlane.f32.xlu1 %v677_v59  ;;  %v710_v59 = vadd.f32 %v620_v35, %v619_v50 }
  0x9e   : > { %675 = vadd.xlane.f32.xlu0 %v674_v61  ;;  %681 = vadd.xlane.f32.xlu2 %v680_v63  ;;  %v716_v61 = vadd.f32 %v624_v53, %v623_v51  ;;  %v627_v63 = vunpack.c.h.bf16 %v3266_v39  ;;  %v735_v53 = vld [vmem:[#allocation2 + $0xe8] sm:$0xff] }
  0xa0   : > { %v722_v54 = vadd.f32 %v628_v3, %v627_v63 }
  0xa5   : > { %687 = vadd.xlane.f32.xlu1 %v686_v62  ;;  %v725_v62 = vld [vmem:[#allocation2 + $0xb0] sm:$0xff] }
  0xa6   : > { %684 = vadd.xlane.f32.xlu0 %v683_v0  ;;  %690 = vadd.xlane.f32.xlu2 %v689_v55  ;;  %v729_v0 = vld [vmem:[#allocation2 + $0x50] sm:$0xff] }
  0xad   : > { %696 = vadd.xlane.f32.xlu1 %v695_v8  ;;  %v726_v8 = vld [vmem:[#allocation2] sm:$0xff] }
  0xae   : > { %693 = vadd.xlane.f32.xlu0 %v692_v12  ;;  %699 = vadd.xlane.f32.xlu2 %v698_v13  ;;  %v730_v12 = vld [vmem:[#allocation2 + $0x68] sm:$0xff] }
  0xb5   : > { %705 = vadd.xlane.f32.xlu1 %v704_v43  ;;  %v731_v43 = vld [vmem:[#allocation2 + $0x30] sm:$0xff] }
  0xb6   : > { %702 = vadd.xlane.f32.xlu0 %v701_v44  ;;  %708 = vadd.xlane.f32.xlu2 %v707_v47  ;;  %v733_v44 = vld [vmem:[#allocation2 + $0x80] sm:$0xff] }
  0xbd   : > { %714 = vadd.xlane.f32.xlu1 %v713_v57  ;;  %v734_v57 = vld [vmem:[#allocation2 + $0x88] sm:$0xff] }
  0xbe   : > { %711 = vadd.xlane.f32.xlu0 %v710_v59  ;;  %717 = vadd.xlane.f32.xlu2 %v716_v61  ;;  %v736_v59 = vld [vmem:[#allocation2 + $0xb8] sm:$0xff] }
  0xc5   : > { %723 = vadd.xlane.f32.xlu1 %v722_v54 }
  0xc6   : > { %720 = vadd.xlane.f32.xlu0 %v719_v46  ;;  %v738_v46 = vld [vmem:[#allocation2 + $0xf0] sm:$0xff] }
  0xe8   : > { %v637_v55 = vpop.xlane.xlu1 %636 }
  0xe9   : > { %v631_v56 = vpop.xlane.xlu0 %630  ;;  %v759_v58 = vadd.f32 %v727_v52, %v637_v55  ;;  %v643_v2 = vpop.xlane.xlu2 %642  ;;  %v737_v52 = vld [vmem:[#allocation2 + $0x60] sm:$0xff] }
  0xea   : > { %v757_v45 = vadd.f32 %v725_v62, %v631_v56  ;;  %v761_v60 = vadd.f32 %v729_v0, %v643_v2  ;;  %v739_v62 = vld [vmem:[#allocation2 + $0x8] sm:$0xff] }
  0xeb   : > { %791 = vst [vmem:[#allocation2 + $0xd8] sm:$0xff] %v759_v58 }
  0xec   : > { %789 = vst [vmem:[#allocation2 + $0xb0] sm:$0xff] %v757_v45 }
  0xed   : > { %793 = vst [vmem:[#allocation2 + $0x50] sm:$0xff] %v761_v60  ;;  %v741_v60 = vld [vmem:[#allocation2 + $0x38] sm:$0xff] }
  0xf0   : > { %v640_v13 = vpop.xlane.xlu1 %639 }
  0xf1   : > { %v634_v14 = vpop.xlane.xlu0 %633  ;;  %v760_v15 = vadd.f32 %v728_v41, %v640_v13  ;;  %v646_v42 = vpop.xlane.xlu2 %645  ;;  %v740_v41 = vld [vmem:[#allocation2 + $0x78] sm:$0xff] }
  0xf2   : > { %v758_v16 = vadd.f32 %v726_v8, %v634_v14  ;;  %v762_v25 = vadd.f32 %v730_v12, %v646_v42  ;;  %v742_v8 = vld [vmem:[#allocation2 + $0x58] sm:$0xff] }
  0xf3   : > { %792 = vst [vmem:[#allocation2 + $0x18] sm:$0xff] %v760_v15 }
  0xf4   : > { %790 = vst [vmem:[#allocation2] sm:$0xff] %v758_v16 }
  0xf5   : > { %794 = vst [vmem:[#allocation2 + $0x68] sm:$0xff] %v762_v25  ;;  %v744_v25 = vld [vmem:[#allocation2 + $0xc8] sm:$0xff] }
  0xf8   : > { %v652_v47 = vpop.xlane.xlu1 %651 }
  0xf9   : > { %v649_v48 = vpop.xlane.xlu0 %648  ;;  %v764_v49 = vadd.f32 %v732_v26, %v652_v47  ;;  %v655_v35 = vpop.xlane.xlu2 %654  ;;  %v743_v26 = vld [vmem:[#allocation2 + $0x40] sm:$0xff] }
  0xfa   : > { %v763_v50 = vadd.f32 %v731_v43, %v649_v48  ;;  %v765_v51 = vadd.f32 %v733_v44, %v655_v35  ;;  %v745_v43 = vld [vmem:[#allocation2 + $0xe0] sm:$0xff] }
  0xfb   : > { %796 = vst [vmem:[#allocation2 + $0x48] sm:$0xff] %v764_v49 }
  0xfc   : > { %795 = vst [vmem:[#allocation2 + $0x30] sm:$0xff] %v763_v50 }
  0xfd   : > { %797 = vst [vmem:[#allocation2 + $0x80] sm:$0xff] %v765_v51  ;;  %v747_v51 = vld [vmem:[#allocation2 + $0x70] sm:$0xff] }
 0x100   : > { %v661_v61 = vpop.xlane.xlu1 %660 }
 0x101   : > { %v658_v63 = vpop.xlane.xlu0 %657  ;;  %v767_v3 = vadd.f32 %v735_v53, %v661_v61  ;;  %v664_v36 = vpop.xlane.xlu2 %663  ;;  %v746_v53 = vld [vmem:[#allocation2 + $0x90] sm:$0xff] }
 0x102   : > { %v766_v4 = vadd.f32 %v734_v57, %v658_v63  ;;  %v768_v54 = vadd.f32 %v736_v59, %v664_v36  ;;  %v748_v57 = vld [vmem:[#allocation2 + $0xc0] sm:$0xff] }
 0x103   : > { %799 = vst [vmem:[#allocation2 + $0xe8] sm:$0xff] %v767_v3 }
 0x104   : > { %798 = vst [vmem:[#allocation2 + $0x88] sm:$0xff] %v766_v4 }
 0x105   : > { %800 = vst [vmem:[#allocation2 + $0xb8] sm:$0xff] %v768_v54  ;;  %v750_v54 = vld [vmem:[#allocation2 + $0xd0] sm:$0xff] }
 0x108   : > { %v670_v0 = vpop.xlane.xlu1 %669 }
 0x109   : > { %v667_v55 = vpop.xlane.xlu0 %666  ;;  %v770_v56 = vadd.f32 %v738_v46, %v670_v0  ;;  %v673_v45 = vpop.xlane.xlu2 %672  ;;  %v749_v46 = vld [vmem:[#allocation2 + $0xa8] sm:$0xff] }
 0x10a   : > { %v769_v58 = vadd.f32 %v737_v52, %v667_v55  ;;  %v771_v2 = vadd.f32 %v739_v62, %v673_v45  ;;  %v751_v52 = vld [vmem:[#allocation2 + $0x10] sm:$0xff] }
 0x10b   : > { %802 = vst [vmem:[#allocation2 + $0xf0] sm:$0xff] %v770_v56 }
 0x10c   : > { %801 = vst [vmem:[#allocation2 + $0x60] sm:$0xff] %v769_v58 }
 0x10d   : > { %803 = vst [vmem:[#allocation2 + $0x8] sm:$0xff] %v771_v2  ;;  %v753_v2 = vld [vmem:[#allocation2 + $0xa0] sm:$0xff] }
 0x110   : > { %v679_v12 = vpop.xlane.xlu1 %678 }
 0x111   : > { %v676_v13 = vpop.xlane.xlu0 %675  ;;  %v773_v14 = vadd.f32 %v741_v60, %v679_v12  ;;  %v682_v16 = vpop.xlane.xlu2 %681  ;;  %v752_v60 = vld [vmem:[#allocation2 + $0x28] sm:$0xff] }
 0x112   : > { %v772_v15 = vadd.f32 %v740_v41, %v676_v13  ;;  %v774_v42 = vadd.f32 %v742_v8, %v682_v16  ;;  %v754_v41 = vld [vmem:[#allocation2 + $0xf8] sm:$0xff] }
 0x113   : > { %805 = vst [vmem:[#allocation2 + $0x38] sm:$0xff] %v773_v14 }
 0x114   : > { %804 = vst [vmem:[#allocation2 + $0x78] sm:$0xff] %v772_v15 }
 0x115   : > { %806 = vst [vmem:[#allocation2 + $0x58] sm:$0xff] %v774_v42  ;;  %v756_v42 = vld [vmem:[#allocation2 + $0x98] sm:$0xff] }
 0x118   : > { %v688_v44 = vpop.xlane.xlu1 %687 }
 0x119   : > { %v685_v47 = vpop.xlane.xlu0 %684  ;;  %v776_v48 = vadd.f32 %v744_v25, %v688_v44  ;;  %v691_v50 = vpop.xlane.xlu2 %690  ;;  %v755_v25 = vld [vmem:[#allocation2 + $0x20] sm:$0xff] }
 0x11a   : > { %v775_v49 = vadd.f32 %v743_v26, %v685_v47  ;;  %v777_v35 = vadd.f32 %v745_v43, %v691_v50 }
 0x11b   : > { %808 = vst [vmem:[#allocation2 + $0xc8] sm:$0xff] %v776_v48 }
 0x11c   : > { %807 = vst [vmem:[#allocation2 + $0x40] sm:$0xff] %v775_v49 }
 0x11d   : > { %809 = vst [vmem:[#allocation2 + $0xe0] sm:$0xff] %v777_v35 }
 0x120   : > { %v697_v59 = vpop.xlane.xlu1 %696 }
 0x121   : > { %v694_v61 = vpop.xlane.xlu0 %693  ;;  %v779_v63 = vadd.f32 %v747_v51, %v697_v59  ;;  %v700_v4 = vpop.xlane.xlu2 %699 }
 0x122   : > { %v778_v3 = vadd.f32 %v746_v53, %v694_v61  ;;  %v780_v36 = vadd.f32 %v748_v57, %v700_v4 }
 0x123   : > { %811 = vst [vmem:[#allocation2 + $0x70] sm:$0xff] %v779_v63 }
 0x124   : > { %810 = vst [vmem:[#allocation2 + $0x90] sm:$0xff] %v778_v3 }
 0x125   : > { %812 = vst [vmem:[#allocation2 + $0xc0] sm:$0xff] %v780_v36 }
 0x128   : > { %v706_v62 = vpop.xlane.xlu1 %705 }
 0x129   : > { %v703_v0 = vpop.xlane.xlu0 %702  ;;  %v782_v55 = vadd.f32 %v750_v54, %v706_v62  ;;  %v709_v58 = vpop.xlane.xlu2 %708 }
 0x12a   : > { %v781_v56 = vadd.f32 %v749_v46, %v703_v0  ;;  %v783_v45 = vadd.f32 %v751_v52, %v709_v58 }
 0x12b   : > { %814 = vst [vmem:[#allocation2 + $0xd0] sm:$0xff] %v782_v55 }
 0x12c   : > { %813 = vst [vmem:[#allocation2 + $0xa8] sm:$0xff] %v781_v56 }
 0x12d   : > { %815 = vst [vmem:[#allocation2 + $0x10] sm:$0xff] %v783_v45 }
 0x130   : > { %v715_v8 = vpop.xlane.xlu1 %714 }
 0x131   : > { %v712_v12 = vpop.xlane.xlu0 %711  ;;  %v785_v13 = vadd.f32 %v753_v2, %v715_v8  ;;  %v718_v15 = vpop.xlane.xlu2 %717 }
 0x132   : > { %v784_v14 = vadd.f32 %v752_v60, %v712_v12  ;;  %v786_v16 = vadd.f32 %v754_v41, %v718_v15 }
 0x133   : > { %817 = vst [vmem:[#allocation2 + $0xa0] sm:$0xff] %v785_v13 }
 0x134   : > { %816 = vst [vmem:[#allocation2 + $0x28] sm:$0xff] %v784_v14 }
 0x135   : > { %818 = vst [vmem:[#allocation2 + $0xf8] sm:$0xff] %v786_v16 }
 0x138   : > { %v724_v26 = vpop.xlane.xlu1 %723 }
 0x139   : > { %v721_v43 = vpop.xlane.xlu0 %720  ;;  %v788_v44 = vadd.f32 %v756_v42, %v724_v26 }
 0x13a   : > { %v787_v47 = vadd.f32 %v755_v25, %v721_v43 }
 0x13b   : > { %820 = vst [vmem:[#allocation2 + $0x98] sm:$0xff] %v788_v44 }
 0x13c   : > { %819 = vst [vmem:[#allocation2 + $0x20] sm:$0xff] %v787_v47 }
 0x13d PF: > { %p821_p7 = scmp.gt.s32.totalorder %s2827_s21, 0  ;;  %p2352_p8 = scmp.le.s32.totalorder %s2827_s21, 0 }
 0x13e   : > { %s825_s26 = sadd.s32 (!%p2352_p8), 1, %s2827_s21 }
 0x13f   : > { %824 = sbr.rel (%p2352_p8) target bundleno = 614 (0x266), region = 75  ;;  %s826_s27 = sand.u32 (!%p2352_p8), 1, %s825_s26 }
 0x140   : > { %s2505_s28 = sshll.u32 (!%p2352_p8), %s826_s27, 7 }
 0x141   : > { %s3338_s30 = scalar_lea.vmem (!%p2352_p8), [#allocation3], %s2505_s28 }
 0x144   : > { %v2513_v48 = vld [vmem:[%s3338_s30 + $0x38] sm:$0xff]  ;;  %v2512_v50 = vld [vmem:[%s3338_s30 + $0x30] sm:$0xff]  ;;  %v2511_v51 = vld [vmem:[%s3338_s30 + $0x28] sm:$0xff] }
 0x145   : > { %v2521_v49 = vld [vmem:[%s3338_s30 + $0x78] sm:$0xff]  ;;  %993 = vmatpush.bf16.msra.mxu0 %v2513_v48  ;;  %2718 = vmatpush.bf16.msra.mxu2 %v2513_v48  ;;  %v2520_v35 = vld [vmem:[%s3338_s30 + $0x70] sm:$0xff]  ;;  %v2519_v53 = vld [vmem:[%s3338_s30 + $0x68] sm:$0xff] }
 0x146   : > { %1082 = vmatpush.bf16.msra.mxu1 %v2521_v49  ;;  %2726 = vmatpush.bf16.msra.mxu3 %v2521_v49  ;;  %v2510_v57 = vld [vmem:[%s3338_s30 + $0x20] sm:$0xff]  ;;  %v2509_v61 = vld [vmem:[%s3338_s30 + $0x18] sm:$0xff]  ;;  %v2508_v3 = vld [vmem:[%s3338_s30 + $0x10] sm:$0xff] }
 0x147   : > { %v2518_v59 = vld [vmem:[%s3338_s30 + $0x60] sm:$0xff]  ;;  %v2517_v63 = vld [vmem:[%s3338_s30 + $0x58] sm:$0xff]  ;;  %v2516_v4 = vld [vmem:[%s3338_s30 + $0x50] sm:$0xff] }
 0x148   : > { %v2507_v36 = vld [vmem:[%s3338_s30 + $0x8] sm:$0xff]  ;;  %v2506_v46 = vld [vmem:[%s3338_s30] sm:$0xff]  ;;  %v3873_v55 = vld [vmem:[#allocation10_spill] sm:$0xff] }
 0x149   : > { %994 = vmatpush.bf16.msra.mxu0 %v2512_v50  ;;  %2719 = vmatpush.bf16.msra.mxu2 %v2512_v50  ;;  %v2515_v54 = vld [vmem:[%s3338_s30 + $0x48] sm:$0xff]  ;;  %v2514_v52 = vld [vmem:[%s3338_s30 + $0x40] sm:$0xff]  ;;  %v3874_v56 = vld [vmem:[#allocation11_spill] sm:$0xff] }
 0x14a   : > { %1083 = vmatpush.bf16.msra.mxu1 %v2520_v35  ;;  %2727 = vmatpush.bf16.msra.mxu3 %v2520_v35  ;;  %v3871_v62 = vld [vmem:[#allocation8_spill] sm:$0xff]  ;;  %v3872_v0 = vld [vmem:[#allocation9_spill] sm:$0xff]  ;;  %v868_v41 = vld [vmem:[#allocation2 + $0x18] sm:$0xff] }
 0x14b   : > { %v3875_v58 = vld [vmem:[#allocation12_spill] sm:$0xff]  ;;  %v884_v16 = vld [vmem:[#allocation2 + $0xc8] sm:$0xff]  ;;  %v869_v43 = vld [vmem:[#allocation2 + $0x50] sm:$0xff] }
 0x14c   : > { %v885_v35 = vld [vmem:[#allocation2 + $0xe0] sm:$0xff] }
 0x14d   : > { %995 = vmatpush.bf16.msra.mxu0 %v2511_v51  ;;  %2720 = vmatpush.bf16.msra.mxu2 %v2511_v51 }
 0x14e   : > { %1084 = vmatpush.bf16.msra.mxu1 %v2519_v53  ;;  %2728 = vmatpush.bf16.msra.mxu3 %v2519_v53 }
 0x151   : > { %996 = vmatpush.bf16.msra.mxu0 %v2510_v57  ;;  %2721 = vmatpush.bf16.msra.mxu2 %v2510_v57 }
 0x152   : > { %1085 = vmatpush.bf16.msra.mxu1 %v2518_v59  ;;  %2729 = vmatpush.bf16.msra.mxu3 %v2518_v59  ;;  %v870_v59 = vld [vmem:[#allocation2 + $0x68] sm:$0xff] }
 0x155   : > { %997 = vmatpush.bf16.msra.mxu0 %v2509_v61  ;;  %2722 = vmatpush.bf16.msra.mxu2 %v2509_v61 }
 0x156   : > { %1086 = vmatpush.bf16.msra.mxu1 %v2517_v63  ;;  %2730 = vmatpush.bf16.msra.mxu3 %v2517_v63 }
 0x159   : > { %998 = vmatpush.bf16.msra.mxu0 %v2508_v3  ;;  %2723 = vmatpush.bf16.msra.mxu2 %v2508_v3 }
 0x15a   : > { %1087 = vmatpush.bf16.msra.mxu1 %v2516_v4  ;;  %2731 = vmatpush.bf16.msra.mxu3 %v2516_v4 }
 0x15d   : > { %999 = vmatpush.bf16.msra.mxu0 %v2507_v36  ;;  %2724 = vmatpush.bf16.msra.mxu2 %v2507_v36 }
 0x15e   : > { %1088 = vmatpush.bf16.msra.mxu1 %v2515_v54  ;;  %2732 = vmatpush.bf16.msra.mxu3 %v2515_v54  ;;  %v886_v54 = vld [vmem:[#allocation2 + $0x90] sm:$0xff] }
 0x161   : > { %1000 = vmatpush.bf16.msra.mxu0 %v2506_v46  ;;  %2725 = vmatpush.bf16.msra.mxu2 %v2506_v46 }
 0x162   : > { %1089 = vmatpush.bf16.msra.mxu1 %v2514_v52  ;;  %2733 = vmatpush.bf16.msra.mxu3 %v2514_v52 }
 0x164   : > { %1001 = vmatmul.bf16.vlgmr.msra.gmra.mxu0 %v3871_v62  ;;  %1041 = vmatmul.bf16.vlgmr.msra.gmra.mxu2 %v3238_v27 }
 0x165   : > { %1090 = vmatmul.bf16.vlgmr.msra.gmra.mxu1 %v3872_v0  ;;  %1130 = vmatmul.bf16.vlgmr.msra.gmra.mxu3 %v3240_v28  ;;  %v866_v28 = vld [vmem:[#allocation2] sm:$0xff]  ;;  %v871_v0 = vld [vmem:[#allocation2 + $0x30] sm:$0xff] }
 0x174   : > { %1006 = vmatmul.bf16.gmra.mxu0 %v3873_v55  ;;  %1046 = vmatmul.bf16.gmra.mxu2 %v3242_v17 }
 0x175   : > { %1095 = vmatmul.bf16.gmra.mxu1 %v3874_v56  ;;  %1135 = vmatmul.bf16.gmra.mxu3 %v3244_v18 }
 0x184   : > { %1011 = vmatmul.bf16.gmra.mxu0 %v3875_v58  ;;  %1051 = vmatmul.bf16.gmra.mxu2 %v3246_v29 }
 0x185   : > { %1100 = vmatmul.bf16.gmra.mxu1 %v3216_v7  ;;  %1140 = vmatmul.bf16.gmra.mxu3 %v3248_v30  ;;  %v865_v7 = vld [vmem:[#allocation2 + $0xb0] sm:$0xff]  ;;  %v882_v30 = vld [vmem:[#allocation2 + $0x58] sm:$0xff] }
 0x194   : > { %1016 = vmatmul.bf16.gmra.mxu0 %v3218_v10  ;;  %1056 = vmatmul.bf16.gmra.mxu2 %v3250_v31 }
 0x195   : > { %1105 = vmatmul.bf16.gmra.mxu1 %v3220_v21  ;;  %1145 = vmatmul.bf16.gmra.mxu3 %v3252_v32 }
 0x1a4   : > { %1021 = vmatmul.bf16.gmra.mxu0 %v3222_v11  ;;  %1061 = vmatmul.bf16.gmra.mxu2 %v3254_v33 }
 0x1a5   : > { %1110 = vmatmul.bf16.gmra.mxu1 %v3224_v5  ;;  %1150 = vmatmul.bf16.gmra.mxu3 %v3256_v34  ;;  %v867_v34 = vld [vmem:[#allocation2 + $0xd8] sm:$0xff] }
 0x1b4   : > { %1026 = vmatmul.bf16.gmra.mxu0 %v3226_v6  ;;  %1066 = vmatmul.bf16.gmra.mxu2 %v3258_v19  ;;  %v881_v6 = vld [vmem:[#allocation2 + $0x38] sm:$0xff] }
 0x1b5   : > { %1115 = vmatmul.bf16.gmra.mxu1 %v3228_v1  ;;  %1155 = vmatmul.bf16.gmra.mxu3 %v3260_v20 }
 0x1c4   : > { %1031 = vmatmul.bf16.gmra.mxu0 %v3230_v22  ;;  %1071 = vmatmul.bf16.gmra.mxu2 %v3262_v37 }
 0x1c5   : > { %1120 = vmatmul.bf16.gmra.mxu1 %v3232_v24  ;;  %1160 = vmatmul.bf16.gmra.mxu3 %v3264_v38 }
 0x1d4   : > { %1036 = vmatmul.bf16.gmra.mxu0 %v3234_v9  ;;  %1076 = vmatmul.bf16.gmra.mxu2 %v3266_v39 }
 0x1d5   : > { %1125 = vmatmul.bf16.gmra.mxu1 %v3236_v23  ;;  %1165 = vmatmul.bf16.gmra.mxu3 %v3268_v40  ;;  %v883_v40 = vld [vmem:[#allocation2 + $0x40] sm:$0xff] }
 0x1e1   : > { %v1002_v11 = vpop.f32.mrf.mxu0 }
 0x1e2   : > { %v1091_v1 = vpop.f32.mrf.mxu1 }
 0x1e3   : > { %v1092_v10 = vadd.f32 %v1091_v1, %v1002_v11  ;;  %v887_v1 = vld [vmem:[#allocation2 + $0x70] sm:$0xff] }
 0x1e5   : > { %v1171_v21 = vadd.f32 %v1092_v10, %v865_v7 }
 0x1e7   : > { %1203 = vst [vmem:[#allocation2 + $0xb0] sm:$0xff] %v1171_v21  ;;  %v1042_v5 = vpop.f32.mrf.mxu2 }
 0x1e8   : > { %v1131_v22 = vpop.f32.mrf.mxu3 }
 0x1e9   : > { %v1132_v24 = vadd.f32 %v1131_v22, %v1042_v5  ;;  %v1004_v27 = vpop.f32.mrf.mxu0 }
 0x1ea   : > { %v1093_v17 = vpop.f32.mrf.mxu1 }
 0x1eb   : > { %v1187_v9 = vadd.f32 %v1132_v24, %v881_v6  ;;  %v1094_v18 = vadd.f32 %v1093_v17, %v1004_v27  ;;  %v872_v6 = vld [vmem:[#allocation2 + $0x48] sm:$0xff] }
 0x1ed   : > { %1219 = vst [vmem:[#allocation2 + $0x38] sm:$0xff] %v1187_v9  ;;  %v1172_v29 = vadd.f32 %v1094_v18, %v866_v28  ;;  %v888_v9 = vld [vmem:[#allocation2 + $0xc0] sm:$0xff] }
 0x1ef   : > { %1204 = vst [vmem:[#allocation2] sm:$0xff] %v1172_v29  ;;  %v1044_v23 = vpop.f32.mrf.mxu2 }
 0x1f0   : > { %v1133_v31 = vpop.f32.mrf.mxu3 }
 0x1f1   : > { %v1134_v32 = vadd.f32 %v1133_v31, %v1044_v23  ;;  %v1007_v33 = vpop.f32.mrf.mxu0 }
 0x1f2   : > { %v1096_v19 = vpop.f32.mrf.mxu1 }
 0x1f3   : > { %v1188_v20 = vadd.f32 %v1134_v32, %v882_v30  ;;  %v1097_v37 = vadd.f32 %v1096_v19, %v1007_v33  ;;  %v873_v30 = vld [vmem:[#allocation2 + $0x80] sm:$0xff] }
 0x1f5   : > { %1220 = vst [vmem:[#allocation2 + $0x58] sm:$0xff] %v1188_v20  ;;  %v1173_v38 = vadd.f32 %v1097_v37, %v867_v34  ;;  %v889_v20 = vld [vmem:[#allocation2 + $0xa8] sm:$0xff] }
 0x1f7   : > { %1205 = vst [vmem:[#allocation2 + $0xd8] sm:$0xff] %v1173_v38  ;;  %v1047_v39 = vpop.f32.mrf.mxu2 }
 0x1f8   : > { %v1136_v45 = vpop.f32.mrf.mxu3 }
 0x1f9   : > { %v1137_v2 = vadd.f32 %v1136_v45, %v1047_v39  ;;  %v1009_v60 = vpop.f32.mrf.mxu0 }
 0x1fa   : > { %v1098_v8 = vpop.f32.mrf.mxu1 }
 0x1fb   : > { %v1189_v12 = vadd.f32 %v1137_v2, %v883_v40  ;;  %v1099_v13 = vadd.f32 %v1098_v8, %v1009_v60  ;;  %v874_v40 = vld [vmem:[#allocation2 + $0x88] sm:$0xff] }
 0x1fd   : > { %1221 = vst [vmem:[#allocation2 + $0x40] sm:$0xff] %v1189_v12  ;;  %v1174_v14 = vadd.f32 %v1099_v13, %v868_v41  ;;  %v890_v12 = vld [vmem:[#allocation2 + $0xd0] sm:$0xff] }
 0x1ff   : > { %1206 = vst [vmem:[#allocation2 + $0x18] sm:$0xff] %v1174_v14  ;;  %v1049_v15 = vpop.f32.mrf.mxu2 }
 0x200   : > { %v1138_v42 = vpop.f32.mrf.mxu3 }
 0x201   : > { %v1139_v25 = vadd.f32 %v1138_v42, %v1049_v15  ;;  %v1012_v26 = vpop.f32.mrf.mxu0 }
 0x202   : > { %v1101_v44 = vpop.f32.mrf.mxu1 }
 0x203   : > { %v1190_v47 = vadd.f32 %v1139_v25, %v884_v16  ;;  %v1102_v48 = vadd.f32 %v1101_v44, %v1012_v26  ;;  %v875_v16 = vld [vmem:[#allocation2 + $0xe8] sm:$0xff] }
 0x205   : > { %1222 = vst [vmem:[#allocation2 + $0xc8] sm:$0xff] %v1190_v47  ;;  %v1175_v49 = vadd.f32 %v1102_v48, %v869_v43  ;;  %v891_v47 = vld [vmem:[#allocation2 + $0x10] sm:$0xff] }
 0x207   : > { %1207 = vst [vmem:[#allocation2 + $0x50] sm:$0xff] %v1175_v49  ;;  %v1052_v50 = vpop.f32.mrf.mxu2 }
 0x208   : > { %v1141_v51 = vpop.f32.mrf.mxu3 }
 0x209   : > { %v1142_v53 = vadd.f32 %v1141_v51, %v1052_v50  ;;  %v1014_v57 = vpop.f32.mrf.mxu0 }
 0x20a   : > { %v1103_v61 = vpop.f32.mrf.mxu1 }
 0x20b   : > { %v1191_v63 = vadd.f32 %v1142_v53, %v885_v35  ;;  %v1104_v3 = vadd.f32 %v1103_v61, %v1014_v57  ;;  %v876_v35 = vld [vmem:[#allocation2 + $0xb8] sm:$0xff] }
 0x20d   : > { %1223 = vst [vmem:[#allocation2 + $0xe0] sm:$0xff] %v1191_v63  ;;  %v1176_v4 = vadd.f32 %v1104_v3, %v870_v59  ;;  %v892_v63 = vld [vmem:[#allocation2 + $0x28] sm:$0xff] }
 0x20f   : > { %1208 = vst [vmem:[#allocation2 + $0x68] sm:$0xff] %v1176_v4  ;;  %v1054_v36 = vpop.f32.mrf.mxu2 }
 0x210   : > { %v1143_v46 = vpop.f32.mrf.mxu3 }
 0x211   : > { %v1144_v52 = vadd.f32 %v1143_v46, %v1054_v36  ;;  %v1017_v62 = vpop.f32.mrf.mxu0 }
 0x212   : > { %v1106_v55 = vpop.f32.mrf.mxu1 }
 0x213   : > { %v1192_v56 = vadd.f32 %v1144_v52, %v886_v54  ;;  %v1107_v58 = vadd.f32 %v1106_v55, %v1017_v62  ;;  %v877_v54 = vld [vmem:[#allocation2 + $0x60] sm:$0xff] }
 0x215   : > { %1224 = vst [vmem:[#allocation2 + $0x90] sm:$0xff] %v1192_v56  ;;  %v1177_v11 = vadd.f32 %v1107_v58, %v871_v0  ;;  %v893_v56 = vld [vmem:[#allocation2 + $0xa0] sm:$0xff] }
 0x217   : > { %1209 = vst [vmem:[#allocation2 + $0x30] sm:$0xff] %v1177_v11  ;;  %v1057_v7 = vpop.f32.mrf.mxu2 }
 0x218   : > { %v1146_v10 = vpop.f32.mrf.mxu3 }
 0x219   : > { %v1147_v21 = vadd.f32 %v1146_v10, %v1057_v7  ;;  %v1019_v5 = vpop.f32.mrf.mxu0 }
 0x21a   : > { %v1108_v22 = vpop.f32.mrf.mxu1 }
 0x21b   : > { %v1193_v24 = vadd.f32 %v1147_v21, %v887_v1  ;;  %v1109_v27 = vadd.f32 %v1108_v22, %v1019_v5  ;;  %v878_v1 = vld [vmem:[#allocation2 + $0xf0] sm:$0xff] }
 0x21d   : > { %1225 = vst [vmem:[#allocation2 + $0x70] sm:$0xff] %v1193_v24  ;;  %v1178_v28 = vadd.f32 %v1109_v27, %v872_v6  ;;  %v894_v24 = vld [vmem:[#allocation2 + $0xf8] sm:$0xff] }
 0x21f   : > { %1210 = vst [vmem:[#allocation2 + $0x48] sm:$0xff] %v1178_v28  ;;  %v1059_v17 = vpop.f32.mrf.mxu2 }
 0x220   : > { %v1148_v18 = vpop.f32.mrf.mxu3 }
 0x221   : > { %v1149_v29 = vadd.f32 %v1148_v18, %v1059_v17  ;;  %v1022_v23 = vpop.f32.mrf.mxu0 }
 0x222   : > { %v1111_v31 = vpop.f32.mrf.mxu1 }
 0x223   : > { %v1194_v32 = vadd.f32 %v1149_v29, %v888_v9  ;;  %v1112_v33 = vadd.f32 %v1111_v31, %v1022_v23  ;;  %v879_v9 = vld [vmem:[#allocation2 + $0x8] sm:$0xff] }
 0x225   : > { %1226 = vst [vmem:[#allocation2 + $0xc0] sm:$0xff] %v1194_v32  ;;  %v1179_v34 = vadd.f32 %v1112_v33, %v873_v30  ;;  %v895_v32 = vld [vmem:[#allocation2 + $0x20] sm:$0xff] }
 0x227   : > { %1211 = vst [vmem:[#allocation2 + $0x80] sm:$0xff] %v1179_v34  ;;  %v1062_v19 = vpop.f32.mrf.mxu2 }
 0x228   : > { %v1151_v37 = vpop.f32.mrf.mxu3 }
 0x229   : > { %v1152_v38 = vadd.f32 %v1151_v37, %v1062_v19  ;;  %v1024_v39 = vpop.f32.mrf.mxu0 }
 0x22a   : > { %v1113_v45 = vpop.f32.mrf.mxu1 }
 0x22b   : > { %v1195_v2 = vadd.f32 %v1152_v38, %v889_v20  ;;  %v1114_v60 = vadd.f32 %v1113_v45, %v1024_v39  ;;  %v880_v20 = vld [vmem:[#allocation2 + $0x78] sm:$0xff] }
 0x22d   : > { %1227 = vst [vmem:[#allocation2 + $0xa8] sm:$0xff] %v1195_v2  ;;  %v1180_v41 = vadd.f32 %v1114_v60, %v874_v40  ;;  %v896_v2 = vld [vmem:[#allocation2 + $0x98] sm:$0xff] }
 0x22f   : > { %1212 = vst [vmem:[#allocation2 + $0x88] sm:$0xff] %v1180_v41  ;;  %v1064_v8 = vpop.f32.mrf.mxu2 }
 0x230   : > { %v1153_v13 = vpop.f32.mrf.mxu3 }
 0x231   : > { %v1154_v14 = vadd.f32 %v1153_v13, %v1064_v8  ;;  %v1027_v15 = vpop.f32.mrf.mxu0 }
 0x232   : > { %v1116_v42 = vpop.f32.mrf.mxu1 }
 0x233   : > { %v1196_v25 = vadd.f32 %v1154_v14, %v890_v12  ;;  %v1117_v26 = vadd.f32 %v1116_v42, %v1027_v15 }
 0x235   : > { %1228 = vst [vmem:[#allocation2 + $0xd0] sm:$0xff] %v1196_v25  ;;  %v1181_v43 = vadd.f32 %v1117_v26, %v875_v16 }
 0x237   : > { %1213 = vst [vmem:[#allocation2 + $0xe8] sm:$0xff] %v1181_v43  ;;  %v1067_v44 = vpop.f32.mrf.mxu2 }
 0x238   : > { %v1156_v48 = vpop.f32.mrf.mxu3 }
 0x239   : > { %v1157_v49 = vadd.f32 %v1156_v48, %v1067_v44  ;;  %v1029_v50 = vpop.f32.mrf.mxu0 }
 0x23a   : > { %v1118_v51 = vpop.f32.mrf.mxu1 }
 0x23b   : > { %v1197_v53 = vadd.f32 %v1157_v49, %v891_v47  ;;  %v1119_v57 = vadd.f32 %v1118_v51, %v1029_v50 }
 0x23d   : > { %1229 = vst [vmem:[#allocation2 + $0x10] sm:$0xff] %v1197_v53  ;;  %v1182_v59 = vadd.f32 %v1119_v57, %v876_v35 }
 0x23f   : > { %1214 = vst [vmem:[#allocation2 + $0xb8] sm:$0xff] %v1182_v59  ;;  %v1069_v61 = vpop.f32.mrf.mxu2 }
 0x240   : > { %v1158_v3 = vpop.f32.mrf.mxu3 }
 0x241   : > { %v1159_v4 = vadd.f32 %v1158_v3, %v1069_v61  ;;  %v1032_v36 = vpop.f32.mrf.mxu0 }
 0x242   : > { %v1121_v46 = vpop.f32.mrf.mxu1 }
 0x243   : > { %v1198_v52 = vadd.f32 %v1159_v4, %v892_v63  ;;  %v1122_v62 = vadd.f32 %v1121_v46, %v1032_v36 }
 0x245   : > { %1230 = vst [vmem:[#allocation2 + $0x28] sm:$0xff] %v1198_v52  ;;  %v1183_v0 = vadd.f32 %v1122_v62, %v877_v54 }
 0x247   : > { %1215 = vst [vmem:[#allocation2 + $0x60] sm:$0xff] %v1183_v0  ;;  %v1072_v55 = vpop.f32.mrf.mxu2 }
 0x248   : > { %v1161_v58 = vpop.f32.mrf.mxu3 }
 0x249   : > { %v1162_v11 = vadd.f32 %v1161_v58, %v1072_v55  ;;  %v1034_v7 = vpop.f32.mrf.mxu0 }
 0x24a   : > { %v1123_v10 = vpop.f32.mrf.mxu1 }
 0x24b   : > { %v1199_v21 = vadd.f32 %v1162_v11, %v893_v56  ;;  %v1124_v5 = vadd.f32 %v1123_v10, %v1034_v7 }
 0x24d   : > { %1231 = vst [vmem:[#allocation2 + $0xa0] sm:$0xff] %v1199_v21  ;;  %v1184_v6 = vadd.f32 %v1124_v5, %v878_v1 }
 0x24f   : > { %1216 = vst [vmem:[#allocation2 + $0xf0] sm:$0xff] %v1184_v6  ;;  %v1074_v22 = vpop.f32.mrf.mxu2 }
 0x250   : > { %v1163_v27 = vpop.f32.mrf.mxu3 }
 0x251   : > { %v1164_v28 = vadd.f32 %v1163_v27, %v1074_v22  ;;  %v1037_v17 = vpop.f32.mrf.mxu0 }
 0x252   : > { %v1126_v18 = vpop.f32.mrf.mxu1 }
 0x253   : > { %v1200_v29 = vadd.f32 %v1164_v28, %v894_v24  ;;  %v1127_v23 = vadd.f32 %v1126_v18, %v1037_v17 }
 0x255   : > { %1232 = vst [vmem:[#allocation2 + $0xf8] sm:$0xff] %v1200_v29  ;;  %v1185_v30 = vadd.f32 %v1127_v23, %v879_v9 }
 0x257   : > { %1217 = vst [vmem:[#allocation2 + $0x8] sm:$0xff] %v1185_v30  ;;  %v1077_v31 = vpop.f32.mrf.mxu2 }
 0x258   : > { %v1166_v33 = vpop.f32.mrf.mxu3 }
 0x259   : > { %v1167_v34 = vadd.f32 %v1166_v33, %v1077_v31  ;;  %v1039_v19 = vpop.f32.mrf.mxu0 }
 0x25a   : > { %v1128_v37 = vpop.f32.mrf.mxu1 }
 0x25b   : > { %v1201_v38 = vadd.f32 %v1167_v34, %v895_v32  ;;  %v1129_v39 = vadd.f32 %v1128_v37, %v1039_v19 }
 0x25d   : > { %1233 = vst [vmem:[#allocation2 + $0x20] sm:$0xff] %v1201_v38  ;;  %v1186_v40 = vadd.f32 %v1129_v39, %v880_v20 }
 0x25f   : > { %1218 = vst [vmem:[#allocation2 + $0x78] sm:$0xff] %v1186_v40  ;;  %v1079_v45 = vpop.f32.mrf.mxu2 }
 0x260   : > { %v1168_v60 = vpop.f32.mrf.mxu3 }
 0x261   : > { %v1169_v41 = vadd.f32 %v1168_v60, %v1079_v45 }
 0x263   : > { %v1202_v8 = vadd.f32 %v1169_v41, %v896_v2 }
 0x265   : > { %1234 = vst [vmem:[#allocation2 + $0x98] sm:$0xff] %v1202_v8 }
 0x266 PF: > { %1238 = sbr.rel (!%p279_p5) target bundleno = 655 (0x28f), region = 79  ;;  %v1239_v12 = vld [vmem:[%s2909_s8] sm:$0x1] (%p279_p5)  ;;  %v1241_v13 = vld [vmem:[#allocation2 + $0xb0] sm:$0xff] (%p279_p5)  ;;  %v1243_v25 = vld [vmem:[#allocation2 + $0xd8] sm:$0xff] (%p279_p5) }
 0x267   : > { %v1240_v14 = vunpack.c.l.bf16 (%p279_p5), %v1239_v12  ;;  %v1273_v15 = vadd.f32 (%p279_p5), 1.0, %v1241_v13  ;;  %v3392_v16 = vld [vmem:[%s2904_s29] ss:$0 sm:$0xff] (%p279_p5)  ;;  %v1275_v43 = vadd.f32 (%p279_p5), 1.0, %v1243_v25  ;;  %v1244_v44 = vld [vmem:[#allocation2 + $0x18] sm:$0xff] (%p279_p5)  ;;  %v1245_v47 = vld [vmem:[#allocation2 + $0x50] sm:$0xff] (%p279_p5) }
 0x268   : > { %v1242_v42 = vld [vmem:[#allocation2] sm:$0xff] (%p279_p5)  ;;  %v1246_v48 = vld [vmem:[#allocation2 + $0x68] sm:$0xff] (%p279_p5)  ;;  %v1276_v50 = vadd.f32 (%p279_p5), 1.0, %v1244_v44  ;;  %v1277_v35 = vadd.f32 (%p279_p5), 1.0, %v1245_v47  ;;  %v1247_v53 = vld [vmem:[#allocation2 + $0x30] sm:$0xff] (%p279_p5) }
 0x269   : > { %v1274_v26 = vadd.f32 (%p279_p5), 1.0, %v1242_v42  ;;  %v3394_v49 = vperm.slane (%p279_p5), %v1240_v14, 0  ;;  %v1278_v51 = vadd.f32 (%p279_p5), 1.0, %v1246_v48  ;;  %v1248_v57 = vld [vmem:[#allocation2 + $0x48] sm:$0xff] (%p279_p5)  ;;  %v1279_v59 = vadd.f32 (%p279_p5), 1.0, %v1247_v53  ;;  %v1249_v54 = vld [vmem:[#allocation2 + $0x80] sm:$0xff] (%p279_p5) }
 0x26a   : > { %v1280_v61 = vadd.f32 (%p279_p5), 1.0, %v1248_v57  ;;  %v1250_v62 = vld [vmem:[#allocation2 + $0x88] sm:$0xff] (%p279_p5)  ;;  %v1252_v55 = vld [vmem:[#allocation2 + $0xb8] sm:$0xff] (%p279_p5)  ;;  %v1253_v1 = vld [vmem:[#allocation2 + $0x60] sm:$0xff] (%p279_p5)  ;;  %v1281_v24 = vadd.f32 (%p279_p5), 1.0, %v1249_v54 }
 0x26b   : > { %v1306_v63 = vmul.f32 %v3394_v49, %v1273_v15  ;;  %v1307_v3 = vmul.f32 %v3394_v49, %v1274_v26  ;;  %v1308_v4 = vmul.f32 %v3394_v49, %v1275_v43  ;;  %v1309_v36 = vmul.f32 %v3394_v49, %v1276_v50  ;;  %v1251_v0 = vld [vmem:[#allocation2 + $0xe8] sm:$0xff]  ;;  %v1254_v10 = vld [vmem:[#allocation2 + $0xf0] sm:$0xff]  ;;  %v1256_v9 = vld [vmem:[#allocation2 + $0x78] sm:$0xff] }
 0x26c   : > { %v1310_v46 = vmul.f32 %v3394_v49, %v1277_v35  ;;  %v1311_v52 = vmul.f32 %v3394_v49, %v1278_v51  ;;  %v1312_v7 = vmul.f32 %v3394_v49, %v1279_v59  ;;  %v1255_v21 = vld [vmem:[#allocation2 + $0x8] sm:$0xff]  ;;  %v1313_v22 = vmul.f32 %v3394_v49, %v1280_v61  ;;  %v1257_v38 = vld [vmem:[#allocation2 + $0x38] sm:$0xff]  ;;  %v1259_v40 = vld [vmem:[#allocation2 + $0x40] sm:$0xff] }
 0x26d   : > { %v1342_v56 = vadd.f32 %v3392_v16, %v1306_v63  ;;  %v1343_v58 = vadd.f32 %v3392_v16, %v1307_v3  ;;  %v1344_v11 = vadd.f32 %v3392_v16, %v1308_v4  ;;  %v1345_v5 = vadd.f32 %v3392_v16, %v1309_v36  ;;  %v1258_v39 = vld [vmem:[#allocation2 + $0x58] sm:$0xff]  ;;  %v1260_v60 = vld [vmem:[#allocation2 + $0xc8] sm:$0xff]  ;;  %v1261_v13 = vld [vmem:[#allocation2 + $0xe0] sm:$0xff] }
 0x26e   : > { %v1346_v6 = vadd.f32 %v3392_v16, %v1310_v46  ;;  %v1282_v27 = vadd.f32 1.0, %v1250_v62  ;;  %v1283_v28 = vadd.f32 1.0, %v1251_v0  ;;  %v1284_v17 = vadd.f32 1.0, %v1252_v55  ;;  %v1262_v26 = vld [vmem:[#allocation2 + $0x90] sm:$0xff]  ;;  %v1264_v53 = vld [vmem:[#allocation2 + $0xc0] sm:$0xff]  ;;  %v1265_v63 = vld [vmem:[#allocation2 + $0xa8] sm:$0xff] }
 0x26f   : > { %1374 = vst [vmem:[#allocation2 + $0xb0] sm:$0xff] %v1342_v56  ;;  %v1347_v18 = vadd.f32 %v3392_v16, %v1311_v52  ;;  %v1285_v29 = vadd.f32 1.0, %v1253_v1  ;;  %v1286_v23 = vadd.f32 1.0, %v1254_v10  ;;  %v1287_v30 = vadd.f32 1.0, %v1255_v21  ;;  %v1263_v48 = vld [vmem:[#allocation2 + $0x70] sm:$0xff]  ;;  %v1269_v21 = vld [vmem:[#allocation2 + $0xa0] sm:$0xff] }
 0x270   : > { %1375 = vst [vmem:[#allocation2] sm:$0xff] %v1343_v58  ;;  %v1348_v31 = vadd.f32 %v3392_v16, %v1312_v7  ;;  %v1314_v32 = vmul.f32 %v3394_v49, %v1281_v24  ;;  %v1315_v33 = vmul.f32 %v3394_v49, %v1282_v27  ;;  %v1316_v34 = vmul.f32 %v3394_v49, %v1283_v28  ;;  %v1266_v54 = vld [vmem:[#allocation2 + $0xd0] sm:$0xff]  ;;  %v1270_v24 = vld [vmem:[#allocation2 + $0xf8] sm:$0xff] }
 0x271   : > { %1376 = vst [vmem:[#allocation2 + $0xd8] sm:$0xff] %v1344_v11  ;;  %v1349_v19 = vadd.f32 %v3392_v16, %v1313_v22  ;;  %v1317_v20 = vmul.f32 %v3394_v49, %v1284_v17  ;;  %v1288_v37 = vadd.f32 1.0, %v1256_v9  ;;  %v1318_v2 = vmul.f32 %v3394_v49, %v1285_v29  ;;  %v1267_v0 = vld [vmem:[#allocation2 + $0x10] sm:$0xff]  ;;  %v1268_v11 = vld [vmem:[#allocation2 + $0x28] sm:$0xff]  ;;  %v1271_v9 = vld [vmem:[#allocation2 + $0x20] sm:$0xff] }
 0x272   : > { %1377 = vst [vmem:[#allocation2 + $0x18] sm:$0xff] %v1345_v5  ;;  %v1350_v45 = vadd.f32 %v3392_v16, %v1314_v32  ;;  %v1351_v41 = vadd.f32 %v3392_v16, %v1315_v33  ;;  %v1319_v8 = vmul.f32 %v3394_v49, %v1286_v23  ;;  %v1320_v12 = vmul.f32 %v3394_v49, %v1287_v30  ;;  %v1272_v30 = vld [vmem:[#allocation2 + $0x98] sm:$0xff] }
 0x273   : > { %1378 = vst [vmem:[#allocation2 + $0x50] sm:$0xff] %v1346_v6  ;;  %v1352_v14 = vadd.f32 %v3392_v16, %v1316_v34  ;;  %v1289_v15 = vadd.f32 1.0, %v1257_v38  ;;  %v1290_v42 = vadd.f32 1.0, %v1258_v39  ;;  %v1291_v25 = vadd.f32 1.0, %v1259_v40 }
 0x274   : > { %1379 = vst [vmem:[#allocation2 + $0x68] sm:$0xff] %v1347_v18  ;;  %v1353_v43 = vadd.f32 %v3392_v16, %v1317_v20  ;;  %v1321_v44 = vmul.f32 %v3394_v49, %v1288_v37  ;;  %v1292_v47 = vadd.f32 1.0, %v1260_v60  ;;  %v1354_v50 = vadd.f32 %v3392_v16, %v1318_v2 }
 0x275   : > { %1380 = vst [vmem:[#allocation2 + $0x30] sm:$0xff] %v1348_v31  ;;  %v1322_v35 = vmul.f32 %v3394_v49, %v1289_v15  ;;  %v1293_v51 = vadd.f32 1.0, %v1261_v13  ;;  %v1355_v57 = vadd.f32 %v3392_v16, %v1319_v8  ;;  %v1323_v59 = vmul.f32 %v3394_v49, %v1290_v42 }
 0x276   : > { %1381 = vst [vmem:[#allocation2 + $0x48] sm:$0xff] %v1349_v19  ;;  %v1294_v61 = vadd.f32 1.0, %v1262_v26  ;;  %v1356_v3 = vadd.f32 %v3392_v16, %v1320_v12  ;;  %v1324_v4 = vmul.f32 %v3394_v49, %v1291_v25  ;;  %v1295_v36 = vadd.f32 1.0, %v1263_v48 }
 0x277   : > { %1382 = vst [vmem:[#allocation2 + $0x80] sm:$0xff] %v1350_v45  ;;  %v1357_v46 = vadd.f32 %v3392_v16, %v1321_v44  ;;  %v1325_v52 = vmul.f32 %v3394_v49, %v1292_v47  ;;  %v1296_v62 = vadd.f32 1.0, %v1264_v53  ;;  %v1358_v55 = vadd.f32 %v3392_v16, %v1322_v35 }
 0x278   : > { %1383 = vst [vmem:[#allocation2 + $0x88] sm:$0xff] %v1351_v41  ;;  %v1326_v56 = vmul.f32 %v3394_v49, %v1293_v51  ;;  %v1297_v58 = vadd.f32 1.0, %v1265_v63  ;;  %v1359_v7 = vadd.f32 %v3392_v16, %v1323_v59  ;;  %v1327_v1 = vmul.f32 %v3394_v49, %v1294_v61 }
 0x279   : > { %1384 = vst [vmem:[#allocation2 + $0xe8] sm:$0xff] %v1352_v14  ;;  %v1298_v10 = vadd.f32 1.0, %v1266_v54  ;;  %v1360_v5 = vadd.f32 %v3392_v16, %v1324_v4  ;;  %v1328_v6 = vmul.f32 %v3394_v49, %v1295_v36  ;;  %v1299_v22 = vadd.f32 1.0, %v1267_v0 }
 0x27a   : > { %1385 = vst [vmem:[#allocation2 + $0xb8] sm:$0xff] %v1353_v43  ;;  %v1361_v27 = vadd.f32 %v3392_v16, %v1325_v52  ;;  %v1329_v28 = vmul.f32 %v3394_v49, %v1296_v62  ;;  %v1300_v17 = vadd.f32 1.0, %v1268_v11  ;;  %v1362_v18 = vadd.f32 %v3392_v16, %v1326_v56 }
 0x27b   : > { %1386 = vst [vmem:[#allocation2 + $0x60] sm:$0xff] %v1354_v50  ;;  %v1330_v29 = vmul.f32 %v3394_v49, %v1297_v58  ;;  %v1301_v23 = vadd.f32 1.0, %v1269_v21  ;;  %v1363_v31 = vadd.f32 %v3392_v16, %v1327_v1  ;;  %v1331_v32 = vmul.f32 %v3394_v49, %v1298_v10 }
 0x27c   : > { %1387 = vst [vmem:[#allocation2 + $0xf0] sm:$0xff] %v1355_v57  ;;  %v1302_v33 = vadd.f32 1.0, %v1270_v24  ;;  %v1364_v34 = vadd.f32 %v3392_v16, %v1328_v6  ;;  %v1332_v19 = vmul.f32 %v3394_v49, %v1299_v22  ;;  %v1303_v20 = vadd.f32 1.0, %v1271_v9 }
 0x27d   : > { %1388 = vst [vmem:[#allocation2 + $0x8] sm:$0xff] %v1356_v3  ;;  %v1365_v37 = vadd.f32 %v3392_v16, %v1329_v28  ;;  %v1333_v38 = vmul.f32 %v3394_v49, %v1300_v17  ;;  %v1304_v39 = vadd.f32 1.0, %v1272_v30  ;;  %v1366_v40 = vadd.f32 %v3392_v16, %v1330_v29 }
 0x27e   : > { %1389 = vst [vmem:[#allocation2 + $0x78] sm:$0xff] %v1357_v46  ;;  %v1334_v45 = vmul.f32 %v3394_v49, %v1301_v23  ;;  %v1367_v2 = vadd.f32 %v3392_v16, %v1331_v32  ;;  %v1335_v60 = vmul.f32 %v3394_v49, %v1302_v33  ;;  %v1368_v41 = vadd.f32 %v3392_v16, %v1332_v19 }
 0x27f   : > { %1390 = vst [vmem:[#allocation2 + $0x38] sm:$0xff] %v1358_v55  ;;  %v1336_v8 = vmul.f32 %v3394_v49, %v1303_v20  ;;  %v1369_v12 = vadd.f32 %v3392_v16, %v1333_v38  ;;  %v1337_v13 = vmul.f32 %v3394_v49, %v1304_v39 }
 0x280   : > { %1391 = vst [vmem:[#allocation2 + $0x58] sm:$0xff] %v1359_v7  ;;  %v1370_v14 = vadd.f32 %v3392_v16, %v1334_v45  ;;  %v1371_v15 = vadd.f32 %v3392_v16, %v1335_v60 }
 0x281   : > { %1392 = vst [vmem:[#allocation2 + $0x40] sm:$0xff] %v1360_v5  ;;  %v1372_v42 = vadd.f32 %v3392_v16, %v1336_v8  ;;  %v1373_v25 = vadd.f32 %v3392_v16, %v1337_v13 }
 0x282   : > { %1393 = vst [vmem:[#allocation2 + $0xc8] sm:$0xff] %v1361_v27 }
 0x283   : > { %1394 = vst [vmem:[#allocation2 + $0xe0] sm:$0xff] %v1362_v18 }
 0x284   : > { %1395 = vst [vmem:[#allocation2 + $0x90] sm:$0xff] %v1363_v31 }
 0x285   : > { %1396 = vst [vmem:[#allocation2 + $0x70] sm:$0xff] %v1364_v34 }
 0x286   : > { %1397 = vst [vmem:[#allocation2 + $0xc0] sm:$0xff] %v1365_v37 }
 0x287   : > { %1398 = vst [vmem:[#allocation2 + $0xa8] sm:$0xff] %v1366_v40 }
 0x288   : > { %1399 = vst [vmem:[#allocation2 + $0xd0] sm:$0xff] %v1367_v2 }
 0x289   : > { %1400 = vst [vmem:[#allocation2 + $0x10] sm:$0xff] %v1368_v41 }
 0x28a   : > { %1401 = vst [vmem:[#allocation2 + $0x28] sm:$0xff] %v1369_v12 }
 0x28b   : > { %1402 = vst [vmem:[#allocation2 + $0xa0] sm:$0xff] %v1370_v14 }
 0x28c   : > { %1403 = vst [vmem:[#allocation2 + $0xf8] sm:$0xff] %v1371_v15 }
 0x28d   : > { %1404 = vst [vmem:[#allocation2 + $0x20] sm:$0xff] %v1372_v42 }
 0x28e   : > { %1405 = vst [vmem:[#allocation2 + $0x98] sm:$0xff] %v1373_v25 }
 0x28f PF: > { %1409 = sbr.rel (!%p821_p7) target bundleno = 880 (0x370), region = 83  ;;  %v2532_v49 = vld [vmem:[%s2909_s8 + $0x38] sm:$0xff] (%p821_p7)  ;;  %v2531_v26 = vld [vmem:[%s2909_s8 + $0x30] sm:$0xff] (%p821_p7)  ;;  %s1410_s7 = sadd.s32 (%p821_p7), 1, %s2827_s21  ;;  %v2530_v16 = vld [vmem:[%s2909_s8 + $0x28] sm:$0xff] (%p821_p7) }
 0x290   : > { %1630 = vmatpush.bf16.msra.mxu0 (%p821_p7), %v2532_v49  ;;  %2734 = vmatpush.bf16.msra.mxu1 (%p821_p7), %v2532_v49  ;;  %s1411_s9 = sand.u32 (%p821_p7), 1, %s1410_s7  ;;  %v2529_v43 = vld [vmem:[%s2909_s8 + $0x20] sm:$0xff] (%p821_p7)  ;;  %v2528_v44 = vld [vmem:[%s2909_s8 + $0x18] sm:$0xff] (%p821_p7)  ;;  %v2527_v48 = vld [vmem:[%s2909_s8 + $0x10] sm:$0xff] (%p821_p7) }
 0x291   : > { %2735 = vmatpush.bf16.msra.mxu2 (%p821_p7), %v2532_v49  ;;  %2736 = vmatpush.bf16.msra.mxu3 (%p821_p7), %v2532_v49  ;;  %s2524_s10 = sshll.u32 (%p821_p7), %s1411_s9, 7  ;;  %v2526_v57 = vld [vmem:[%s2909_s8 + $0x8] sm:$0xff] (%p821_p7)  ;;  %v1482_v61 = vld [vmem:[#allocation2 + $0xb0] sm:$0xff] (%p821_p7)  ;;  %v1483_v63 = vld [vmem:[#allocation2] sm:$0xff] (%p821_p7) }
 0x292   : > { %s3468_s12 = scalar_lea.vmem (%p821_p7), [#allocation3], %s2524_s10  ;;  %v1490_v54 = vld [vmem:[#allocation2 + $0x80] sm:$0xff] (%p821_p7)  ;;  %v1491_v46 = vld [vmem:[#allocation2 + $0x88] sm:$0xff] (%p821_p7)  ;;  %v1498_v62 = vld [vmem:[#allocation2 + $0x38] sm:$0xff] (%p821_p7) }
 0x293   : > { %v2545_v47 = vld [vmem:[%s3468_s12] sm:$0xff] (%p821_p7)   ;;  %v1499_v56 = vld [vmem:[#allocation2 + $0x58] sm:$0xff] (%p821_p7)  ;;  %v1506_v58 = vld [vmem:[#allocation2 + $0xa8] sm:$0xff] (%p821_p7) }
 0x294   : > { %1631 = vmatpush.bf16.msra.mxu0 %v2531_v26  ;;  %2737 = vmatpush.bf16.msra.mxu1 %v2531_v26  ;;  %v2691_v50 = vld [vmem:[%s3468_s12 + $0x20] sm:$0xff]   ;;  %v2546_v53 = vunpack.c.l.bf16 %v2545_v47  ;;  %v2547_v59 = vunpack.c.h.bf16 %v2545_v47  ;;  %v1507_v11 = vld [vmem:[#allocation2 + $0xd0] sm:$0xff]  ;;  %v2688_v29 = vld [vmem:[%s3468_s12 + $0x8] sm:$0xff]  }
 0x295   : > { %2738 = vmatpush.bf16.msra.mxu2 %v2531_v26  ;;  %2739 = vmatpush.bf16.msra.mxu3 %v2531_v26  ;;  %v2695_v35 = vld [vmem:[%s3468_s12 + $0x40] sm:$0xff]   ;;  %v2562_v3 = vunpack.c.l.bf16 %v2691_v50  ;;  %v2563_v4 = vunpack.c.h.bf16 %v2691_v50  ;;  %v2692_v23 = vld [vmem:[%s3468_s12 + $0x28] sm:$0xff]   ;;  %v2550_v32 = vunpack.c.l.bf16 %v2688_v29  ;;  %v2551_v33 = vunpack.c.h.bf16 %v2688_v29  ;;  %v1484_v34 = vld [vmem:[#allocation2 + $0xd8] sm:$0xff] }
 0x296   : > { %v2699_v51 = vld [vmem:[%s3468_s12 + $0x60] sm:$0xff]   ;;  %v2578_v36 = vunpack.c.l.bf16 %v2695_v35  ;;  %v2579_v52 = vunpack.c.h.bf16 %v2695_v35  ;;  %v1514_v7 = vadd.f32 %v2546_v53, %v1482_v61  ;;  %v1515_v1 = vadd.f32 %v2547_v59, %v1483_v63  ;;  %v2696_v30 = vld [vmem:[%s3468_s12 + $0x48] sm:$0xff]   ;;  %v1485_v19 = vld [vmem:[#allocation2 + $0x18] sm:$0xff] }
 0x297   : > { %v2594_v0 = vunpack.c.l.bf16 %v2699_v51  ;;  %v2595_v55 = vunpack.c.h.bf16 %v2699_v51  ;;  %v1522_v10 = vadd.f32 %v2562_v3, %v1490_v54  ;;  %v1523_v21 = vadd.f32 %v2563_v4, %v1491_v46  ;;  %v2525_v6 = vld [vmem:[%s2909_s8] sm:$0xff]  ;;  %v2700_v31 = vld [vmem:[%s3468_s12 + $0x68] sm:$0xff]   ;;  %v1493_v39 = vld [vmem:[#allocation2 + $0xb8] sm:$0xff] }
 0x298   : > { %1632 = vmatpush.bf16.msra.mxu0 %v2530_v16  ;;  %2740 = vmatpush.bf16.msra.mxu1 %v2530_v16  ;;  %v1530_v5 = vadd.f32 %v2578_v36, %v1498_v62  ;;  %v1531_v22 = vadd.f32 %v2579_v52, %v1499_v56  ;;  %v1546_v28 = vpack.c.bf16 %v1515_v1, %v1514_v7  ;;  %v2566_v20 = vunpack.c.l.bf16 %v2692_v23  ;;  %v1492_v38 = vld [vmem:[#allocation2 + $0xe8] sm:$0xff]  ;;  %v1500_v2 = vld [vmem:[#allocation2 + $0x40] sm:$0xff]  ;;  %v1508_v12 = vld [vmem:[#allocation2 + $0x10] sm:$0xff] }
 0x299   : > { %2741 = vmatpush.bf16.msra.mxu2 %v2530_v16  ;;  %2742 = vmatpush.bf16.msra.mxu3 %v2530_v16  ;;  %v1538_v24 = vadd.f32 %v2594_v0, %v1506_v58  ;;  %v1539_v27 = vadd.f32 %v2595_v55, %v1507_v11  ;;  %v1550_v17 = vpack.c.bf16 %v1523_v21, %v1522_v10  ;;  %v2567_v37 = vunpack.c.h.bf16 %v2692_v23  ;;  %v1501_v8 = vld [vmem:[#allocation2 + $0xc8] sm:$0xff]  ;;  %v2689_v35 = vld [vmem:[%s3468_s12 + $0x10] sm:$0xff]   ;;  %v1494_v54 = vld [vmem:[#allocation2 + $0x60] sm:$0xff] }
 0x29a   : > { %v1554_v9 = vpack.c.bf16 %v1531_v22, %v1530_v5  ;;  %v2582_v40 = vunpack.c.l.bf16 %v2696_v30  ;;  %v2583_v45 = vunpack.c.h.bf16 %v2696_v30  ;;  %v2598_v60 = vunpack.c.l.bf16 %v2700_v31  ;;  %v1509_v13 = vld [vmem:[#allocation2 + $0x28] sm:$0xff]  ;;  %v2693_v51 = vld [vmem:[%s3468_s12 + $0x30] sm:$0xff]   ;;  %v1502_v0 = vld [vmem:[#allocation2 + $0xe0] sm:$0xff] }
 0x29b   : > { %v1558_v18 = vpack.c.bf16 %v1539_v27, %v1538_v24  ;;  %v2599_v41 = vunpack.c.h.bf16 %v2700_v31  ;;  %v1516_v14 = vadd.f32 %v2550_v32, %v1484_v34  ;;  %v1517_v15 = vadd.f32 %v2551_v33, %v1485_v19  ;;  %v2697_v53 = vld [vmem:[%s3468_s12 + $0x50] sm:$0xff]   ;;  %v1487_v3 = vld [vmem:[#allocation2 + $0x68] sm:$0xff]  ;;  %v1510_v11 = vld [vmem:[#allocation2 + $0xa0] sm:$0xff] }
 0x29c   : > { %1633 = vmatpush.bf16.msra.mxu0 %v2529_v43  ;;  %2743 = vmatpush.bf16.msra.mxu1 %v2529_v43  ;;  %v1524_v42 = vadd.f32 %v2566_v20, %v1492_v38  ;;  %v1525_v25 = vadd.f32 %v2567_v37, %v1493_v39  ;;  %v1532_v49 = vadd.f32 %v2582_v40, %v1500_v2  ;;  %v2554_v59 = vunpack.c.l.bf16 %v2689_v35  ;;  %v1486_v63 = vld [vmem:[#allocation2 + $0x50] sm:$0xff]  ;;  %v1511_v7 = vld [vmem:[#allocation2 + $0xf8] sm:$0xff]  ;;  %v1489_v19 = vld [vmem:[#allocation2 + $0x48] sm:$0xff] }
 0x29d   : > { %2744 = vmatpush.bf16.msra.mxu2 %v2529_v43  ;;  %2745 = vmatpush.bf16.msra.mxu3 %v2529_v43  ;;  %v1533_v26 = vadd.f32 %v2583_v45, %v1501_v8  ;;  %v1540_v16 = vadd.f32 %v2598_v60, %v1508_v12  ;;  %v1541_v43 = vadd.f32 %v2599_v41, %v1509_v13  ;;  %v2555_v61 = vunpack.c.h.bf16 %v2689_v35  ;;  %v1495_v46 = vld [vmem:[#allocation2 + $0xf0] sm:$0xff]  ;;  %v2690_v29 = vld [vmem:[%s3468_s12 + $0x18] sm:$0xff]   ;;  %v1496_v38 = vld [vmem:[#allocation2 + $0x8] sm:$0xff] }
 0x29e   : > { %v1551_v47 = vpack.c.bf16 %v1525_v25, %v1524_v42  ;;  %v2570_v4 = vunpack.c.l.bf16 %v2693_v51  ;;  %v2571_v36 = vunpack.c.h.bf16 %v2693_v51  ;;  %v2586_v52 = vunpack.c.l.bf16 %v2697_v53  ;;  %v1503_v58 = vld [vmem:[#allocation2 + $0x90] sm:$0xff]  ;;  %v2694_v23 = vld [vmem:[%s3468_s12 + $0x38] sm:$0xff]   ;;  %v1505_v8 = vld [vmem:[#allocation2 + $0xc0] sm:$0xff] }
 0x29f   : > { %v1559_v50 = vpack.c.bf16 %v1541_v43, %v1540_v16  ;;  %v2587_v62 = vunpack.c.h.bf16 %v2697_v53  ;;  %v1518_v1 = vadd.f32 %v2554_v59, %v1486_v63  ;;  %v1519_v10 = vadd.f32 %v2555_v61, %v1487_v3  ;;  %v2698_v30 = vld [vmem:[%s3468_s12 + $0x58] sm:$0xff]   ;;  %v1488_v34 = vld [vmem:[#allocation2 + $0x30] sm:$0xff]  ;;  %v1512_v12 = vld [vmem:[#allocation2 + $0x20] sm:$0xff] }
 0x2a0   : > { %1634 = vmatpush.bf16.msra.mxu0 %v2528_v44  ;;  %2746 = vmatpush.bf16.msra.mxu1 %v2528_v44  ;;  %v1526_v21 = vadd.f32 %v2570_v4, %v1494_v54  ;;  %v1527_v5 = vadd.f32 %v2571_v36, %v1495_v46  ;;  %v2702_v31 = vld [vmem:[%s3468_s12 + $0x78] sm:$0xff]   ;;  %v2558_v32 = vunpack.c.l.bf16 %v2690_v29  ;;  %v2559_v33 = vunpack.c.h.bf16 %v2690_v29  ;;  %v1504_v2 = vld [vmem:[#allocation2 + $0x70] sm:$0xff]  ;;  %v3490_v35 = vld [vmem:[%s2904_s29] ss:$0 sm:$0xff] }
 0x2a1   : > { %2747 = vmatpush.bf16.msra.mxu2 %v2528_v44  ;;  %2748 = vmatpush.bf16.msra.mxu3 %v2528_v44  ;;  %v1547_v44 = vpack.c.bf16 %v1517_v15, %v1516_v14  ;;  %v1535_v22 = vadd.f32 %v2587_v62, %v1503_v58  ;;  %v2574_v20 = vunpack.c.l.bf16 %v2694_v23  ;;  %v2575_v37 = vunpack.c.h.bf16 %v2694_v23  ;;  %v1497_v39 = vld [vmem:[#allocation2 + $0x78] sm:$0xff] }
 0x2a2   : > { %v2590_v40 = vunpack.c.l.bf16 %v2698_v30  ;;  %v2591_v45 = vunpack.c.h.bf16 %v2698_v30  ;;  %v2606_v60 = vunpack.c.l.bf16 %v2702_v31  ;;  %v2607_v41 = vunpack.c.h.bf16 %v2702_v31  ;;  %v1513_v13 = vld [vmem:[#allocation2 + $0x98] sm:$0xff] }
 0x2a3   : > { %v1520_v14 = vadd.f32 %v2558_v32, %v1488_v34  ;;  %v1521_v15 = vadd.f32 %v2559_v33, %v1489_v19  ;;  %v1528_v42 = vadd.f32 %v2574_v20, %v1496_v38  ;;  %v1529_v25 = vadd.f32 %v2575_v37, %v1497_v39 }
 0x2a4   : > { %1635 = vmatpush.bf16.msra.mxu0 %v2527_v48  ;;  %2749 = vmatpush.bf16.msra.mxu1 %v2527_v48  ;;  %v1544_v16 = vadd.f32 %v2606_v60, %v1512_v12  ;;  %v1545_v43 = vadd.f32 %v2607_v41, %v1513_v13 }
 0x2a5   : > { %2750 = vmatpush.bf16.msra.mxu2 %v2527_v48  ;;  %2751 = vmatpush.bf16.msra.mxu3 %v2527_v48  ;;  %v1555_v48 = vpack.c.bf16 %v1533_v26, %v1532_v49  ;;  %v1536_v49 = vadd.f32 %v2590_v40, %v1504_v2  ;;  %v1537_v26 = vadd.f32 %v2591_v45, %v1505_v8 }
 0x2a8   : > { %1636 = vmatpush.bf16.msra.mxu0 %v2526_v57  ;;  %2752 = vmatpush.bf16.msra.mxu1 %v2526_v57 }
 0x2a9   : > { %2753 = vmatpush.bf16.msra.mxu2 %v2526_v57  ;;  %2754 = vmatpush.bf16.msra.mxu3 %v2526_v57  ;;  %v2701_v57 = vld [vmem:[%s3468_s12 + $0x70] sm:$0xff]  }
 0x2aa   : > { %v2602_v55 = vunpack.c.l.bf16 %v2701_v57  ;;  %v2603_v56 = vunpack.c.h.bf16 %v2701_v57 }
 0x2ac   : > { %1637 = vmatpush.bf16.msra.mxu0 %v2525_v6  ;;  %2755 = vmatpush.bf16.msra.mxu1 %v2525_v6  ;;  %v1542_v24 = vadd.f32 %v2602_v55, %v1510_v11  ;;  %v1543_v27 = vadd.f32 %v2603_v56, %v1511_v7 }
 0x2ad   : > { %2756 = vmatpush.bf16.msra.mxu2 %v2525_v6  ;;  %2757 = vmatpush.bf16.msra.mxu3 %v2525_v6  ;;  %v1534_v6 = vadd.f32 %v2586_v52, %v1502_v0 }
 0x2af   : > { %1638 = vmatmul.bf16.vlgmr.msra.gmra.mxu0 %v1546_v28  ;;  %1658 = vmatmul.bf16.vlgmr.msra.gmra.mxu1 %v1550_v17  ;;  %v1548_v28 = vpack.c.bf16 %v1519_v10, %v1518_v1  ;;  %v1552_v17 = vpack.c.bf16 %v1527_v5, %v1526_v21 }
 0x2b0   : > { %1678 = vmatmul.bf16.vlgmr.msra.gmra.mxu2 %v1554_v9  ;;  %1698 = vmatmul.bf16.vlgmr.msra.gmra.mxu3 %v1558_v18  ;;  %v1556_v9 = vpack.c.bf16 %v1535_v22, %v1534_v6  ;;  %v1560_v18 = vpack.c.bf16 %v1543_v27, %v1542_v24 }
 0x2bf   : > { %1643 = vmatmul.bf16.gmra.mxu0 %v1547_v44  ;;  %1663 = vmatmul.bf16.gmra.mxu1 %v1551_v47  ;;  %v1549_v44 = vpack.c.bf16 %v1521_v15, %v1520_v14  ;;  %v1553_v47 = vpack.c.bf16 %v1529_v25, %v1528_v42 }
 0x2c0   : > { %1683 = vmatmul.bf16.gmra.mxu2 %v1555_v48  ;;  %1703 = vmatmul.bf16.gmra.mxu3 %v1559_v50  ;;  %v1557_v48 = vpack.c.bf16 %v1537_v26, %v1536_v49  ;;  %v1561_v50 = vpack.c.bf16 %v1545_v43, %v1544_v16 }
 0x2cf   : > { %1648 = vmatmul.bf16.gmra.mxu0 %v1548_v28  ;;  %1668 = vmatmul.bf16.gmra.mxu1 %v1552_v17 }
 0x2d0   : > { %1688 = vmatmul.bf16.gmra.mxu2 %v1556_v9  ;;  %1708 = vmatmul.bf16.gmra.mxu3 %v1560_v18 }
 0x2df   : > { %1653 = vmatmul.bf16.gmra.mxu0 %v1549_v44  ;;  %1673 = vmatmul.bf16.gmra.mxu1 %v1553_v47 }
 0x2e0   : > { %1693 = vmatmul.bf16.gmra.mxu2 %v1557_v48  ;;  %1713 = vmatmul.bf16.gmra.mxu3 %v1561_v50 }
 0x32c   : > { %v1639_v51 = vpop.f32.mrf.mxu0  ;;  %v1659_v53 = vpop.f32.mrf.mxu1 }
 0x32d   : > { %v1640_v57 = vadd.f32 %v3490_v35, %v1639_v51  ;;  %v1660_v59 = vadd.f32 %v3490_v35, %v1659_v53 }
 0x32f   : > { %1719 = vst [vmem:[#allocation2 + $0xb0] sm:$0xff] %v1640_v57 }
 0x330   : > { %1727 = vst [vmem:[#allocation2 + $0x80] sm:$0xff] %v1660_v59 }
 0x333   : > { %v1679_v61 = vpop.f32.mrf.mxu2  ;;  %v1699_v63 = vpop.f32.mrf.mxu3 }
 0x334   : > { %v1680_v3 = vadd.f32 %v3490_v35, %v1679_v61  ;;  %v1700_v4 = vadd.f32 %v3490_v35, %v1699_v63  ;;  %v1641_v36 = vpop.f32.mrf.mxu0  ;;  %v1661_v54 = vpop.f32.mrf.mxu1 }
 0x335   : > { %v1642_v46 = vadd.f32 %v3490_v35, %v1641_v36  ;;  %v1662_v52 = vadd.f32 %v3490_v35, %v1661_v54 }
 0x336   : > { %1735 = vst [vmem:[#allocation2 + $0x38] sm:$0xff] %v1680_v3 }
 0x337   : > { %1743 = vst [vmem:[#allocation2 + $0xa8] sm:$0xff] %v1700_v4 }
 0x338   : > { %1720 = vst [vmem:[#allocation2] sm:$0xff] %v1642_v46 }
 0x339   : > { %1728 = vst [vmem:[#allocation2 + $0x88] sm:$0xff] %v1662_v52 }
 0x33b   : > { %v1681_v62 = vpop.f32.mrf.mxu2  ;;  %v1701_v0 = vpop.f32.mrf.mxu3 }
 0x33c   : > { %v1682_v55 = vadd.f32 %v3490_v35, %v1681_v62  ;;  %v1702_v56 = vadd.f32 %v3490_v35, %v1701_v0  ;;  %v1644_v58 = vpop.f32.mrf.mxu0  ;;  %v1664_v11 = vpop.f32.mrf.mxu1 }
 0x33d   : > { %v1645_v7 = vadd.f32 %v3490_v35, %v1644_v58  ;;  %v1665_v1 = vadd.f32 %v3490_v35, %v1664_v11 }
 0x33e   : > { %1736 = vst [vmem:[#allocation2 + $0x58] sm:$0xff] %v1682_v55 }
 0x33f   : > { %1744 = vst [vmem:[#allocation2 + $0xd0] sm:$0xff] %v1702_v56 }
 0x340   : > { %1721 = vst [vmem:[#allocation2 + $0xd8] sm:$0xff] %v1645_v7 }
 0x341   : > { %1729 = vst [vmem:[#allocation2 + $0xe8] sm:$0xff] %v1665_v1 }
 0x343   : > { %v1684_v10 = vpop.f32.mrf.mxu2  ;;  %v1704_v21 = vpop.f32.mrf.mxu3 }
 0x344   : > { %v1685_v5 = vadd.f32 %v3490_v35, %v1684_v10  ;;  %v1705_v6 = vadd.f32 %v3490_v35, %v1704_v21  ;;  %v1646_v22 = vpop.f32.mrf.mxu0  ;;  %v1666_v24 = vpop.f32.mrf.mxu1 }
 0x345   : > { %v1647_v27 = vadd.f32 %v3490_v35, %v1646_v22  ;;  %v1667_v28 = vadd.f32 %v3490_v35, %v1666_v24 }
 0x346   : > { %1737 = vst [vmem:[#allocation2 + $0x40] sm:$0xff] %v1685_v5 }
 0x347   : > { %1745 = vst [vmem:[#allocation2 + $0x10] sm:$0xff] %v1705_v6 }
 0x348   : > { %1722 = vst [vmem:[#allocation2 + $0x18] sm:$0xff] %v1647_v27 }
 0x349   : > { %1730 = vst [vmem:[#allocation2 + $0xb8] sm:$0xff] %v1667_v28 }
 0x34b   : > { %v1686_v17 = vpop.f32.mrf.mxu2  ;;  %v1706_v9 = vpop.f32.mrf.mxu3 }
 0x34c   : > { %v1687_v18 = vadd.f32 %v3490_v35, %v1686_v17  ;;  %v1707_v29 = vadd.f32 %v3490_v35, %v1706_v9  ;;  %v1649_v23 = vpop.f32.mrf.mxu0  ;;  %v1669_v30 = vpop.f32.mrf.mxu1 }
 0x34d   : > { %v1650_v31 = vadd.f32 %v3490_v35, %v1649_v23  ;;  %v1670_v32 = vadd.f32 %v3490_v35, %v1669_v30 }
 0x34e   : > { %1738 = vst [vmem:[#allocation2 + $0xc8] sm:$0xff] %v1687_v18 }
 0x34f   : > { %1746 = vst [vmem:[#allocation2 + $0x28] sm:$0xff] %v1707_v29 }
 0x350   : > { %1723 = vst [vmem:[#allocation2 + $0x50] sm:$0xff] %v1650_v31 }
 0x351   : > { %1731 = vst [vmem:[#allocation2 + $0x60] sm:$0xff] %v1670_v32 }
 0x353   : > { %v1689_v33 = vpop.f32.mrf.mxu2  ;;  %v1709_v34 = vpop.f32.mrf.mxu3 }
 0x354   : > { %v1690_v19 = vadd.f32 %v3490_v35, %v1689_v33  ;;  %v1710_v20 = vadd.f32 %v3490_v35, %v1709_v34  ;;  %v1651_v37 = vpop.f32.mrf.mxu0  ;;  %v1671_v38 = vpop.f32.mrf.mxu1 }
 0x355   : > { %v1652_v39 = vadd.f32 %v3490_v35, %v1651_v37  ;;  %v1672_v40 = vadd.f32 %v3490_v35, %v1671_v38 }
 0x356   : > { %1739 = vst [vmem:[#allocation2 + $0xe0] sm:$0xff] %v1690_v19 }
 0x357   : > { %1747 = vst [vmem:[#allocation2 + $0xa0] sm:$0xff] %v1710_v20 }
 0x358   : > { %1724 = vst [vmem:[#allocation2 + $0x68] sm:$0xff] %v1652_v39 }
 0x359   : > { %1732 = vst [vmem:[#allocation2 + $0xf0] sm:$0xff] %v1672_v40 }
 0x35b   : > { %v1691_v45 = vpop.f32.mrf.mxu2  ;;  %v1711_v2 = vpop.f32.mrf.mxu3 }
 0x35c   : > { %v1692_v60 = vadd.f32 %v3490_v35, %v1691_v45  ;;  %v1712_v41 = vadd.f32 %v3490_v35, %v1711_v2  ;;  %v1654_v8 = vpop.f32.mrf.mxu0  ;;  %v1674_v12 = vpop.f32.mrf.mxu1 }
 0x35d   : > { %v1655_v13 = vadd.f32 %v3490_v35, %v1654_v8  ;;  %v1675_v14 = vadd.f32 %v3490_v35, %v1674_v12 }
 0x35e   : > { %1740 = vst [vmem:[#allocation2 + $0x90] sm:$0xff] %v1692_v60 }
 0x35f   : > { %1748 = vst [vmem:[#allocation2 + $0xf8] sm:$0xff] %v1712_v41 }
 0x360   : > { %1725 = vst [vmem:[#allocation2 + $0x30] sm:$0xff] %v1655_v13 }
 0x361   : > { %1733 = vst [vmem:[#allocation2 + $0x8] sm:$0xff] %v1675_v14 }
 0x363   : > { %v1694_v15 = vpop.f32.mrf.mxu2  ;;  %v1714_v42 = vpop.f32.mrf.mxu3 }
 0x364   : > { %v1695_v25 = vadd.f32 %v3490_v35, %v1694_v15  ;;  %v1715_v49 = vadd.f32 %v3490_v35, %v1714_v42  ;;  %v1656_v26 = vpop.f32.mrf.mxu0  ;;  %v1676_v16 = vpop.f32.mrf.mxu1 }
 0x365   : > { %v1657_v43 = vadd.f32 %v3490_v35, %v1656_v26  ;;  %v1677_v44 = vadd.f32 %v3490_v35, %v1676_v16 }
 0x366   : > { %1741 = vst [vmem:[#allocation2 + $0x70] sm:$0xff] %v1695_v25 }
 0x367   : > { %1749 = vst [vmem:[#allocation2 + $0x20] sm:$0xff] %v1715_v49 }
 0x368   : > { %1726 = vst [vmem:[#allocation2 + $0x48] sm:$0xff] %v1657_v43 }
 0x369   : > { %1734 = vst [vmem:[#allocation2 + $0x78] sm:$0xff] %v1677_v44 }
 0x36b   : > { %v1696_v47 = vpop.f32.mrf.mxu2  ;;  %v1716_v48 = vpop.f32.mrf.mxu3 }
 0x36c   : > { %v1697_v50 = vadd.f32 %v3490_v35, %v1696_v47  ;;  %v1717_v51 = vadd.f32 %v3490_v35, %v1716_v48 }
 0x36e   : > { %1742 = vst [vmem:[#allocation2 + $0xc0] sm:$0xff] %v1697_v50 }
 0x36f   : > { %1750 = vst [vmem:[#allocation2 + $0x98] sm:$0xff] %v1717_v51 }
 0x370 PF: > { %v2540_v53 = vld [vmem:[%s2914_s11 + $0x38] sm:$0xff]  ;;  %v2539_v57 = vld [vmem:[%s2914_s11 + $0x30] sm:$0xff]  ;;  %v2538_v59 = vld [vmem:[%s2914_s11 + $0x28] sm:$0xff]  ;;  %p2489_p9 = scmp.ne.s32.totalorder %s2827_s21, 2 }
 0x371   : > { %1902 = vmatpush.bf16.msra.mxu0 %v2540_v53  ;;  %2758 = vmatpush.bf16.msra.mxu1 %v2540_v53  ;;  %v2537_v35 = vld [vmem:[%s2914_s11 + $0x20] sm:$0xff]  ;;  %v2536_v61 = vld [vmem:[%s2914_s11 + $0x18] sm:$0xff]  ;;  %v2535_v63 = vld [vmem:[%s2914_s11 + $0x10] sm:$0xff] }
 0x372   : > { %2759 = vmatpush.bf16.msra.mxu2 %v2540_v53  ;;  %2760 = vmatpush.bf16.msra.mxu3 %v2540_v53  ;;  %v2534_v3 = vld [vmem:[%s2914_s11 + $0x8] sm:$0xff]  ;;  %v1754_v4 = vld [vmem:[#allocation2 + $0xb0] sm:$0xff]  ;;  %v1755_v36 = vld [vmem:[#allocation2] sm:$0xff] }
 0x373   : > { %v1762_v54 = vld [vmem:[#allocation2 + $0x80] sm:$0xff]  ;;  %v1763_v46 = vld [vmem:[#allocation2 + $0x88] sm:$0xff]  ;;  %v1770_v52 = vld [vmem:[#allocation2 + $0x38] sm:$0xff]  ;;  %v1786_v56 = vmax.f32 %v1754_v4, 0.0  ;;  %v1787_v58 = vmax.f32 %v1755_v36, 0.0 }
 0x374   : > { %v1771_v62 = vld [vmem:[#allocation2 + $0x58] sm:$0xff]  ;;  %v1778_v0 = vld [vmem:[#allocation2 + $0xa8] sm:$0xff]  ;;  %v1779_v55 = vld [vmem:[#allocation2 + $0xd0] sm:$0xff]  ;;  %v1794_v11 = vmax.f32 %v1762_v54, 0.0  ;;  %v1795_v7 = vmax.f32 %v1763_v46, 0.0  ;;  %v1802_v10 = vmax.f32 %v1770_v52, 0.0 }
 0x375   : > { %1903 = vmatpush.bf16.msra.mxu0 %v2539_v57  ;;  %2761 = vmatpush.bf16.msra.mxu1 %v2539_v57  ;;  %v2533_v1 = vld [vmem:[%s2914_s11] sm:$0xff]  ;;  %v1803_v21 = vmax.f32 %v1771_v62, 0.0  ;;  %v1810_v5 = vmax.f32 %v1778_v0, 0.0  ;;  %v1811_v6 = vmax.f32 %v1779_v55, 0.0  ;;  %v1818_v22 = vpack.c.bf16 %v1787_v58, %v1786_v56  ;;  %v1756_v17 = vld [vmem:[#allocation2 + $0xd8] sm:$0xff]  ;;  %v1764_v18 = vld [vmem:[#allocation2 + $0xe8] sm:$0xff] }
 0x376   : > { %2762 = vmatpush.bf16.msra.mxu2 %v2539_v57  ;;  %2763 = vmatpush.bf16.msra.mxu3 %v2539_v57  ;;  %v1822_v24 = vpack.c.bf16 %v1795_v7, %v1794_v11  ;;  %v1757_v9 = vld [vmem:[#allocation2 + $0x18] sm:$0xff]  ;;  %v1772_v23 = vld [vmem:[#allocation2 + $0x40] sm:$0xff]  ;;  %v1773_v30 = vld [vmem:[#allocation2 + $0xc8] sm:$0xff]  ;;  %v1788_v33 = vmax.f32 %v1756_v17, 0.0  ;;  %v1796_v19 = vmax.f32 %v1764_v18, 0.0  ;;  %s2055_s11 = sand.u32 1, %s2827_s21 }
 0x377   : > { %v1826_v27 = vpack.c.bf16 %v1803_v21, %v1802_v10  ;;  %v1830_v28 = vpack.c.bf16 %v1811_v6, %v1810_v5  ;;  %v1765_v29 = vld [vmem:[#allocation2 + $0xb8] sm:$0xff]  ;;  %v1780_v31 = vld [vmem:[#allocation2 + $0x10] sm:$0xff]  ;;  %v1781_v32 = vld [vmem:[#allocation2 + $0x28] sm:$0xff]  ;;  %v1789_v34 = vmax.f32 %v1757_v9, 0.0  ;;  %v1804_v37 = vmax.f32 %v1772_v23, 0.0  ;;  %s2541_s25 = sshll.u32 %s2055_s11, 7 }
 0x378   : > { %v1797_v20 = vmax.f32 %v1765_v29, 0.0  ;;  %v1805_v38 = vmax.f32 %v1773_v30, 0.0  ;;  %v1812_v39 = vmax.f32 %v1780_v31, 0.0  ;;  %v1813_v40 = vmax.f32 %v1781_v32, 0.0  ;;  %v1758_v8 = vld [vmem:[#allocation2 + $0x50] sm:$0xff]  ;;  %v1759_v12 = vld [vmem:[#allocation2 + $0x68] sm:$0xff] }
 0x379   : > { %1904 = vmatpush.bf16.msra.mxu0 %v2538_v59  ;;  %2764 = vmatpush.bf16.msra.mxu1 %v2538_v59  ;;  %v1819_v45 = vpack.c.bf16 %v1789_v34, %v1788_v33  ;;  %v1766_v13 = vld [vmem:[#allocation2 + $0x60] sm:$0xff]  ;;  %v1767_v14 = vld [vmem:[#allocation2 + $0xf0] sm:$0xff]  ;;  %v1783_v49 = vld [vmem:[#allocation2 + $0xf8] sm:$0xff]  ;;  %v1790_v26 = vmax.f32 %v1758_v8, 0.0  ;;  %v1791_v16 = vmax.f32 %v1759_v12, 0.0 }
 0x37a   : > { %2765 = vmatpush.bf16.msra.mxu2 %v2538_v59  ;;  %2766 = vmatpush.bf16.msra.mxu3 %v2538_v59  ;;  %v1823_v2 = vpack.c.bf16 %v1797_v20, %v1796_v19  ;;  %v1827_v60 = vpack.c.bf16 %v1805_v38, %v1804_v37  ;;  %v1831_v41 = vpack.c.bf16 %v1813_v40, %v1812_v39  ;;  %v1774_v15 = vld [vmem:[#allocation2 + $0xe0] sm:$0xff]  ;;  %v1775_v42 = vld [vmem:[#allocation2 + $0x90] sm:$0xff]  ;;  %v1798_v43 = vmax.f32 %v1766_v13, 0.0  ;;  %v1769_v4 = vld [vmem:[#allocation2 + $0x78] sm:$0xff] }
 0x37b   : > { %v1782_v25 = vld [vmem:[#allocation2 + $0xa0] sm:$0xff]  ;;  %v1799_v44 = vmax.f32 %v1767_v14, 0.0  ;;  %v1806_v47 = vmax.f32 %v1774_v15, 0.0  ;;  %v1807_v48 = vmax.f32 %v1775_v42, 0.0  ;;  %v1815_v51 = vmax.f32 %v1783_v49, 0.0  ;;  %v1776_v36 = vld [vmem:[#allocation2 + $0x70] sm:$0xff] }
 0x37c   : > { %v1814_v50 = vmax.f32 %v1782_v25, 0.0  ;;  %v1820_v53 = vpack.c.bf16 %v1791_v16, %v1790_v26  ;;  %v1777_v54 = vld [vmem:[#allocation2 + $0xc0] sm:$0xff]  ;;  %v1785_v52 = vld [vmem:[#allocation2 + $0x98] sm:$0xff]  ;;  %v1801_v56 = vmax.f32 %v1769_v4, 0.0  ;;  %v1808_v58 = vmax.f32 %v1776_v36, 0.0 }
 0x37d   : > { %1905 = vmatpush.bf16.msra.mxu0 %v2537_v35  ;;  %2767 = vmatpush.bf16.msra.mxu1 %v2537_v35  ;;  %v1824_v57 = vpack.c.bf16 %v1799_v44, %v1798_v43  ;;  %v1828_v59 = vpack.c.bf16 %v1807_v48, %v1806_v47  ;;  %v1784_v46 = vld [vmem:[#allocation2 + $0x20] sm:$0xff]  ;;  %v1809_v11 = vmax.f32 %v1777_v54, 0.0 }
 0x37e   : > { %2768 = vmatpush.bf16.msra.mxu2 %v2537_v35  ;;  %2769 = vmatpush.bf16.msra.mxu3 %v2537_v35  ;;  %v1832_v35 = vpack.c.bf16 %v1815_v51, %v1814_v50  ;;  %v1816_v7 = vmax.f32 %v1784_v46, 0.0 }
 0x37f   : > { %v1829_v5 = vpack.c.bf16 %v1809_v11, %v1808_v58 }
 0x381   : > { %1906 = vmatpush.bf16.msra.mxu0 %v2536_v61  ;;  %2770 = vmatpush.bf16.msra.mxu1 %v2536_v61 }
 0x382   : > { %2771 = vmatpush.bf16.msra.mxu2 %v2536_v61  ;;  %2772 = vmatpush.bf16.msra.mxu3 %v2536_v61  ;;  %v1760_v61 = vld [vmem:[#allocation2 + $0x30] sm:$0xff] }
 0x383   : > { %v1792_v62 = vmax.f32 %v1760_v61, 0.0 }
 0x385   : > { %1907 = vmatpush.bf16.msra.mxu0 %v2535_v63  ;;  %2773 = vmatpush.bf16.msra.mxu1 %v2535_v63 }
 0x386   : > { %2774 = vmatpush.bf16.msra.mxu2 %v2535_v63  ;;  %2775 = vmatpush.bf16.msra.mxu3 %v2535_v63  ;;  %v1761_v63 = vld [vmem:[#allocation2 + $0x48] sm:$0xff] }
 0x387   : > { %v1793_v0 = vmax.f32 %v1761_v63, 0.0 }
 0x389   : > { %1908 = vmatpush.bf16.msra.mxu0 %v2534_v3  ;;  %2776 = vmatpush.bf16.msra.mxu1 %v2534_v3  ;;  %v1821_v10 = vpack.c.bf16 %v1793_v0, %v1792_v62 }
 0x38a   : > { %2777 = vmatpush.bf16.msra.mxu2 %v2534_v3  ;;  %2778 = vmatpush.bf16.msra.mxu3 %v2534_v3  ;;  %v1768_v3 = vld [vmem:[#allocation2 + $0x8] sm:$0xff] }
 0x38b   : > { %v1800_v55 = vmax.f32 %v1768_v3, 0.0 }
 0x38d   : > { %1909 = vmatpush.bf16.msra.mxu0 %v2533_v1  ;;  %2779 = vmatpush.bf16.msra.mxu1 %v2533_v1  ;;  %v1825_v21 = vpack.c.bf16 %v1801_v56, %v1800_v55 }
 0x38e   : > { %2780 = vmatpush.bf16.msra.mxu2 %v2533_v1  ;;  %2781 = vmatpush.bf16.msra.mxu3 %v2533_v1  ;;  %v1817_v1 = vmax.f32 %v1785_v52, 0.0 }
 0x390   : > { %1910 = vmatmul.bf16.vlgmr.msra.gmra.mxu0 %v1818_v22  ;;  %1930 = vmatmul.bf16.vlgmr.msra.gmra.mxu1 %v1822_v24  ;;  %v1833_v6 = vpack.c.bf16 %v1817_v1, %v1816_v7  ;;  %v3537_v22 = vld [vmem:[%s277_s14] ss:$0 sm:$0xff]  ;;  %s3574_s14 = scalar_lea.vmem [#allocation3], %s2541_s25 }
 0x391   : > { %1950 = vmatmul.bf16.vlgmr.msra.gmra.mxu2 %v1826_v27  ;;  %1970 = vmatmul.bf16.vlgmr.msra.gmra.mxu3 %v1830_v28 }
 0x3a0   : > { %1915 = vmatmul.bf16.gmra.mxu0 %v1819_v45  ;;  %1935 = vmatmul.bf16.gmra.mxu1 %v1823_v2 }
 0x3a1   : > { %1955 = vmatmul.bf16.gmra.mxu2 %v1827_v60  ;;  %1975 = vmatmul.bf16.gmra.mxu3 %v1831_v41 }
 0x3b0   : > { %1920 = vmatmul.bf16.gmra.mxu0 %v1820_v53  ;;  %1940 = vmatmul.bf16.gmra.mxu1 %v1824_v57 }
 0x3b1   : > { %1960 = vmatmul.bf16.gmra.mxu2 %v1828_v59  ;;  %1980 = vmatmul.bf16.gmra.mxu3 %v1832_v35 }
 0x3c0   : > { %1925 = vmatmul.bf16.gmra.mxu0 %v1821_v10  ;;  %1945 = vmatmul.bf16.gmra.mxu1 %v1825_v21 }
 0x3c1   : > { %1965 = vmatmul.bf16.gmra.mxu2 %v1829_v5  ;;  %1985 = vmatmul.bf16.gmra.mxu3 %v1833_v6 }
 0x40d   : > { %v1911_v24 = vpop.f32.mrf.mxu0  ;;  %v1931_v27 = vpop.f32.mrf.mxu1 }
 0x40e   : > { %v1912_v28 = vadd.f32 %v3537_v22, %v1911_v24  ;;  %v1932_v17 = vadd.f32 %v3537_v22, %v1931_v27 }
 0x410   : > { %v3541_v9 = vmax.f32 %v1912_v28, 0.0  ;;  %v3543_v18 = vmax.f32 %v1932_v17, 0.0 }
 0x412   : > { %v2031_v23 = vpack.c.bf16 %v3543_v18, %v3543_v18 }
 0x414   : > { %v1951_v30 = vpop.f32.mrf.mxu2  ;;  %v1971_v31 = vpop.f32.mrf.mxu3 }
 0x415   : > { %v1952_v32 = vadd.f32 %v3537_v22, %v1951_v30  ;;  %v1972_v33 = vadd.f32 %v3537_v22, %v1971_v31  ;;  %v1913_v34 = vpop.f32.mrf.mxu0  ;;  %v1933_v19 = vpop.f32.mrf.mxu1 }
 0x416   : > { %v1914_v20 = vadd.f32 %v3537_v22, %v1913_v34  ;;  %v1934_v37 = vadd.f32 %v3537_v22, %v1933_v19 }
 0x417   : > { %v3554_v38 = vmax.f32 %v1952_v32, 0.0  ;;  %v3556_v39 = vmax.f32 %v1972_v33, 0.0 }
 0x418   : > { %v3558_v40 = vmax.f32 %v1914_v20, 0.0  ;;  %v3560_v45 = vmax.f32 %v1934_v37, 0.0 }
 0x419   : > { %v2047_v60 = vpack.c.bf16 %v3556_v39, %v3556_v39 }
 0x41a   : > { %v2611_v8 = vpack.c.bf16 %v3558_v40, %v3541_v9  ;;  %v2032_v12 = vpack.c.bf16 %v3560_v45, %v3560_v45  ;;  %v2631_v13 = vpack.c.bf16 %v3560_v45, %v3543_v18 }
 0x41c   : > { %2612 = vst [vmem:[%s3574_s14] sm:$0xff] %v2611_v8   ;;  %v1953_v14 = vpop.f32.mrf.mxu2  ;;  %v1973_v15 = vpop.f32.mrf.mxu3 }
 0x41d   : > { %2706 = vst [vmem:[%s3574_s14 + $0x20] sm:$0xff] %v2631_v13   ;;  %v1954_v42 = vadd.f32 %v3537_v22, %v1953_v14  ;;  %v1974_v25 = vadd.f32 %v3537_v22, %v1973_v15  ;;  %v1916_v49 = vpop.f32.mrf.mxu0  ;;  %v1936_v26 = vpop.f32.mrf.mxu1 }
 0x41e   : > { %v1917_v16 = vadd.f32 %v3537_v22, %v1916_v49  ;;  %v1937_v43 = vadd.f32 %v3537_v22, %v1936_v26 }
 0x41f   : > { %v3582_v44 = vmax.f32 %v1954_v42, 0.0  ;;  %v3584_v47 = vmax.f32 %v1974_v25, 0.0 }
 0x420   : > { %v3586_v48 = vmax.f32 %v1917_v16, 0.0  ;;  %v3588_v50 = vmax.f32 %v1937_v43, 0.0 }
 0x421   : > { %v2651_v53 = vpack.c.bf16 %v3582_v44, %v3554_v38  ;;  %v2048_v57 = vpack.c.bf16 %v3584_v47, %v3584_v47  ;;  %v2671_v59 = vpack.c.bf16 %v3584_v47, %v3556_v39 }
 0x422   : > { %v2025_v35 = vpack.c.bf16 %v3586_v48, %v3586_v48  ;;  %v2033_v61 = vpack.c.bf16 %v3588_v50, %v3588_v50 }
 0x423   : > { %2710 = vst [vmem:[%s3574_s14 + $0x40] sm:$0xff] %v2651_v53  }
 0x424   : > { %2714 = vst [vmem:[%s3574_s14 + $0x60] sm:$0xff] %v2671_v59   ;;  %v1956_v63 = vpop.f32.mrf.mxu2  ;;  %v1976_v3 = vpop.f32.mrf.mxu3 }
 0x425   : > { %v1957_v4 = vadd.f32 %v3537_v22, %v1956_v63  ;;  %v1977_v36 = vadd.f32 %v3537_v22, %v1976_v3  ;;  %v1918_v54 = vpop.f32.mrf.mxu0  ;;  %v1938_v46 = vpop.f32.mrf.mxu1 }
 0x426   : > { %v1919_v52 = vadd.f32 %v3537_v22, %v1918_v54  ;;  %v1939_v62 = vadd.f32 %v3537_v22, %v1938_v46 }
 0x427   : > { %v3608_v0 = vmax.f32 %v1957_v4, 0.0  ;;  %v3610_v55 = vmax.f32 %v1977_v36, 0.0 }
 0x428   : > { %v3612_v56 = vmax.f32 %v1919_v52, 0.0  ;;  %v3614_v58 = vmax.f32 %v1939_v62, 0.0 }
 0x429   : > { %v2049_v7 = vpack.c.bf16 %v3610_v55, %v3610_v55 }
 0x42a   : > { %v2616_v10 = vpack.c.bf16 %v3612_v56, %v3586_v48  ;;  %v2034_v21 = vpack.c.bf16 %v3614_v58, %v3614_v58  ;;  %v2636_v5 = vpack.c.bf16 %v3614_v58, %v3588_v50 }
 0x42c   : > { %2703 = vst [vmem:[%s3574_s14 + $0x8] sm:$0xff] %v2616_v10   ;;  %v1958_v6 = vpop.f32.mrf.mxu2  ;;  %v1978_v24 = vpop.f32.mrf.mxu3 }
 0x42d   : > { %2707 = vst [vmem:[%s3574_s14 + $0x28] sm:$0xff] %v2636_v5   ;;  %v1959_v27 = vadd.f32 %v3537_v22, %v1958_v6  ;;  %v1979_v28 = vadd.f32 %v3537_v22, %v1978_v24  ;;  %v1921_v17 = vpop.f32.mrf.mxu0  ;;  %v1941_v30 = vpop.f32.mrf.mxu1 }
 0x42e   : > { %v1922_v31 = vadd.f32 %v3537_v22, %v1921_v17  ;;  %v1942_v32 = vadd.f32 %v3537_v22, %v1941_v30 }
 0x42f   : > { %v3634_v33 = vmax.f32 %v1959_v27, 0.0  ;;  %v3636_v34 = vmax.f32 %v1979_v28, 0.0 }
 0x430   : > { %v3638_v19 = vmax.f32 %v1922_v31, 0.0  ;;  %v3640_v20 = vmax.f32 %v1942_v32, 0.0 }
 0x431   : > { %v2656_v8 = vpack.c.bf16 %v3634_v33, %v3608_v0  ;;  %v2050_v13 = vpack.c.bf16 %v3636_v34, %v3636_v34  ;;  %v2676_v14 = vpack.c.bf16 %v3636_v34, %v3610_v55 }
 0x432   : > { %v2027_v15 = vpack.c.bf16 %v3638_v19, %v3638_v19  ;;  %v2035_v42 = vpack.c.bf16 %v3640_v20, %v3640_v20 }
 0x433   : > { %2711 = vst [vmem:[%s3574_s14 + $0x48] sm:$0xff] %v2656_v8  }
 0x434   : > { %2715 = vst [vmem:[%s3574_s14 + $0x68] sm:$0xff] %v2676_v14   ;;  %v1961_v25 = vpop.f32.mrf.mxu2  ;;  %v1981_v49 = vpop.f32.mrf.mxu3 }
 0x435   : > { %v1962_v26 = vadd.f32 %v3537_v22, %v1961_v25  ;;  %v1982_v16 = vadd.f32 %v3537_v22, %v1981_v49  ;;  %v1923_v43 = vpop.f32.mrf.mxu0  ;;  %v1943_v53 = vpop.f32.mrf.mxu1 }
 0x436   : > { %v1924_v59 = vadd.f32 %v3537_v22, %v1923_v43  ;;  %v1944_v63 = vadd.f32 %v3537_v22, %v1943_v53 }
 0x437   : > { %v3660_v3 = vmax.f32 %v1962_v26, 0.0  ;;  %v3662_v4 = vmax.f32 %v1982_v16, 0.0 }
 0x438   : > { %v3664_v36 = vmax.f32 %v1924_v59, 0.0  ;;  %v3666_v54 = vmax.f32 %v1944_v63, 0.0 }
 0x439   : > { %v2043_v46 = vpack.c.bf16 %v3660_v3, %v3660_v3  ;;  %v2051_v52 = vpack.c.bf16 %v3662_v4, %v3662_v4 }
 0x43a   : > { %v2028_v62 = vpack.c.bf16 %v3664_v36, %v3664_v36  ;;  %v2621_v10 = vpack.c.bf16 %v3664_v36, %v3638_v19  ;;  %v2036_v5 = vpack.c.bf16 %v3666_v54, %v3666_v54  ;;  %v2641_v6 = vpack.c.bf16 %v3666_v54, %v3640_v20 }
 0x43c   : > { %2704 = vst [vmem:[%s3574_s14 + $0x10] sm:$0xff] %v2621_v10   ;;  %v1963_v24 = vpop.f32.mrf.mxu2  ;;  %v1983_v27 = vpop.f32.mrf.mxu3 }
 0x43d   : > { %2708 = vst [vmem:[%s3574_s14 + $0x30] sm:$0xff] %v2641_v6   ;;  %v1964_v28 = vadd.f32 %v3537_v22, %v1963_v24  ;;  %v1984_v17 = vadd.f32 %v3537_v22, %v1983_v27  ;;  %v1926_v30 = vpop.f32.mrf.mxu0  ;;  %v1946_v31 = vpop.f32.mrf.mxu1 }
 0x43e   : > { %v1927_v32 = vadd.f32 %v3537_v22, %v1926_v30  ;;  %v1947_v8 = vadd.f32 %v3537_v22, %v1946_v31 }
 0x43f   : > { %v3686_v14 = vmax.f32 %v1964_v28, 0.0  ;;  %v2020_v25 = vmax.f32 %v1984_v17, 0.0 }
 0x440   : > { %v3688_v49 = vmax.f32 %v1927_v32, 0.0  ;;  %v2005_v26 = vmax.f32 %v1947_v8, 0.0 }
 0x441   : > { %v2044_v16 = vpack.c.bf16 %v3686_v14, %v3686_v14  ;;  %v2661_v43 = vpack.c.bf16 %v3686_v14, %v3660_v3  ;;  %v2052_v53 = vpack.c.bf16 %v2020_v25, %v2020_v25  ;;  %v2681_v59 = vpack.c.bf16 %v2020_v25, %v3662_v4 }
 0x442   : > { %v2029_v63 = vpack.c.bf16 %v3688_v49, %v3688_v49  ;;  %v2037_v54 = vpack.c.bf16 %v2005_v26, %v2005_v26 }
 0x443   : > { %2712 = vst [vmem:[%s3574_s14 + $0x50] sm:$0xff] %v2661_v43  }
 0x444   : > { %2716 = vst [vmem:[%s3574_s14 + $0x70] sm:$0xff] %v2681_v59   ;;  %v1966_v10 = vpop.f32.mrf.mxu2  ;;  %v1986_v6 = vpop.f32.mrf.mxu3 }
 0x445   : > { %v1967_v24 = vadd.f32 %v3537_v22, %v1966_v10  ;;  %v1987_v27 = vadd.f32 %v3537_v22, %v1986_v6  ;;  %v1928_v28 = vpop.f32.mrf.mxu0  ;;  %v1948_v17 = vpop.f32.mrf.mxu1 }
 0x446   : > { %v1929_v30 = vadd.f32 %v3537_v22, %v1928_v28  ;;  %v1949_v31 = vadd.f32 %v3537_v22, %v1948_v17 }
 0x447   : > { %v2013_v32 = vmax.f32 %v1967_v24, 0.0  ;;  %v2021_v8 = vmax.f32 %v1987_v27, 0.0 }
 0x448   : > { %v1998_v25 = vmax.f32 %v1929_v30, 0.0  ;;  %v2006_v51 = vmax.f32 %v1949_v31, 0.0 }
 0x449   : > { %v2045_v43 = vpack.c.bf16 %v2013_v32, %v2013_v32  ;;  %v2053_v59 = vpack.c.bf16 %v2021_v8, %v2021_v8 }
 0x44a   : > { %v2030_v2 = vpack.c.bf16 %v1998_v25, %v1998_v25  ;;  %v2626_v10 = vpack.c.bf16 %v1998_v25, %v3688_v49  ;;  %v2038_v41 = vpack.c.bf16 %v2006_v51, %v2006_v51  ;;  %v2646_v6 = vpack.c.bf16 %v2006_v51, %v2005_v26 }
 0x44c   : > { %2705 = vst [vmem:[%s3574_s14 + $0x18] sm:$0xff] %v2626_v10   ;;  %v1968_v29 = vpop.f32.mrf.mxu2  ;;  %v1988_v37 = vpop.f32.mrf.mxu3 }
 0x44d   : > { %2709 = vst [vmem:[%s3574_s14 + $0x38] sm:$0xff] %v2646_v6   ;;  %v1969_v28 = vadd.f32 %v3537_v22, %v1968_v29  ;;  %v1989_v24 = vadd.f32 %v3537_v22, %v1988_v37 }
 0x44f   : > { %v2014_v27 = vmax.f32 %v1969_v28, 0.0  ;;  %v2022_v17 = vmax.f32 %v1989_v24, 0.0 }
 0x450   : > { %2097 = sbr.rel (%p2489_p9) target bundleno = 1283 (0x503), region = 91 }
 0x451   : > { %v2046_v30 = vpack.c.bf16 %v2014_v27, %v2014_v27  ;;  %v2666_v31 = vpack.c.bf16 %v2014_v27, %v2013_v32  ;;  %v2054_v11 = vpack.c.bf16 %v2022_v17, %v2022_v17  ;;  %v2686_v1 = vpack.c.bf16 %v2022_v17, %v2021_v8 }
 0x453   : > { %2713 = vst [vmem:[%s3574_s14 + $0x58] sm:$0xff] %v2666_v31  }
 0x454   : > { %2717 = vst [vmem:[%s3574_s14 + $0x78] sm:$0xff] %v2686_v1  }
 0x455   : > { %v2162_v51 = vunpack.c.l.b16 %v2037_v54  ;;  %v2163_v26 = vunpack.c.l.b16 %v2038_v41  ;;  %v2178_v25 = vunpack.c.l.b16 %v2053_v59  ;;  %v2179_v10 = vunpack.c.l.b16 %v2054_v11 }
 0x456   : > { %v2160_v29 = vunpack.c.l.b16 %v2035_v42  ;;  %v2161_v22 = vunpack.c.l.b16 %v2036_v5  ;;  %v2176_v37 = vunpack.c.l.b16 %v2051_v52  ;;  %v2177_v32 = vunpack.c.l.b16 %v2052_v53 }
 0x457   : > { %v2187_v8 = vpack.c.b16 %v2163_v26, %v2162_v51  ;;  %v2195_v6 = vpack.c.b16 %v2179_v10, %v2178_v25  ;;  %v2158_v1 = vunpack.c.l.b16 %v2033_v61  ;;  %v2159_v41 = vunpack.c.l.b16 %v2034_v21  ;;  %v2105_v10 = vld [vmem:[%s3819_s6 + $0x8] sm:$0xff] }
 0x458   : > { %v2186_v11 = vpack.c.b16 %v2161_v22, %v2160_v29  ;;  %v2194_v20 = vpack.c.b16 %v2177_v32, %v2176_v37  ;;  %v2174_v42 = vunpack.c.l.b16 %v2049_v7  ;;  %v2175_v4 = vunpack.c.l.b16 %v2050_v13 }
 0x459   : > { %2212 = vmatpush.bf16.msra.mxu0 %v2187_v8  ;;  %2226 = vmatpush.bf16.msra.mxu1 %v2195_v6  ;;  %v2185_v52 = vpack.c.b16 %v2159_v41, %v2158_v1  ;;  %v2156_v50 = vunpack.c.l.b16 %v2031_v23  ;;  %v2157_v58 = vunpack.c.l.b16 %v2032_v12  ;;  %v2172_v55 = vunpack.c.l.b16 %v2047_v60 }
 0x45a   : > { %v2193_v61 = vpack.c.b16 %v2175_v4, %v2174_v42  ;;  %v2173_v7 = vunpack.c.l.b16 %v2048_v57  ;;  %v2154_v18 = vunpack.c.l.b16 %v2029_v63  ;;  %v2155_v23 = vunpack.c.l.b16 %v2030_v2 }
 0x45b   : > { %v2184_v21 = vpack.c.b16 %v2157_v58, %v2156_v50  ;;  %v2170_v13 = vunpack.c.l.b16 %v2045_v43  ;;  %v2171_v45 = vunpack.c.l.b16 %v2046_v30  ;;  %v2152_v39 = vunpack.c.l.b16 %v2027_v15  ;;  %v2104_v30 = vld [vmem:[%s3819_s6] sm:$0xff] }
 0x45c   : > { %v2192_v34 = vpack.c.b16 %v2173_v7, %v2172_v55  ;;  %v2183_v12 = vpack.c.b16 %v2155_v23, %v2154_v18  ;;  %v2153_v47 = vunpack.c.l.b16 %v2028_v62  ;;  %v2168_v2 = vunpack.c.l.b16 %v2043_v46 }
 0x45d   : > { %2213 = vmatpush.bf16.msra.mxu0 %v2186_v11  ;;  %2227 = vmatpush.bf16.msra.mxu1 %v2194_v20  ;;  %v2191_v60 = vpack.c.b16 %v2171_v45, %v2170_v13  ;;  %v2169_v57 = vunpack.c.l.b16 %v2044_v16  ;;  %v2150_v19 = vunpack.c.l.b16 %v2025_v35  ;;  %v3876_v15 = vpack.c.bf16 %v3612_v56, %v3612_v56 }
 0x45e   : > { %v2182_v36 = vpack.c.b16 %v2153_v47, %v2152_v39  ;;  %v3877_v3 = vpack.c.bf16 %v3608_v0, %v3608_v0  ;;  %v3878_v14 = vpack.c.bf16 %v3634_v33, %v3634_v33  ;;  %v3879_v48 = vpack.c.bf16 %v3541_v9, %v3541_v9  ;;  %v2492_v9 = vld [vmem:[%s3818_s5] sm:$0xf] }
 0x45f   : > { %v2151_v5 = vunpack.c.l.b16 %v3876_v15  ;;  %v2190_v62 = vpack.c.b16 %v2169_v57, %v2168_v2  ;;  %v3880_v53 = vpack.c.bf16 %v3558_v40, %v3558_v40  ;;  %v3881_v0 = vpack.c.bf16 %v3554_v38, %v3554_v38  ;;  %v2543_v40 = vld [vmem:[%s3818_s5 + $0x4] sm:$0xf0]  ;;  %v2542_v38 = vld [vmem:[%s3818_s5 + $0x4] sm:$0xf] }
 0x460   : > { %v2166_v46 = vunpack.c.l.b16 %v3877_v3  ;;  %v2167_v49 = vunpack.c.l.b16 %v3878_v14  ;;  %v2148_v35 = vunpack.c.l.b16 %v3879_v48  ;;  %v3882_v33 = vpack.c.bf16 %v3582_v44, %v3582_v44  ;;  %v2494_v44 = vld [vmem:[%s3818_s5 + $0x8] sm:$0xf0] }
 0x461   : > { %2214 = vmatpush.bf16.msra.mxu0 %v2185_v52  ;;  %2228 = vmatpush.bf16.msra.mxu1 %v2193_v61  ;;  %v2181_v16 = vpack.c.b16 %v2151_v5, %v2150_v19  ;;  %v2149_v63 = vunpack.c.l.b16 %v3880_v53  ;;  %v2164_v54 = vunpack.c.l.b16 %v3881_v0  ;;  %v2493_v24 = vor.u32 %v2543_v40, %v2492_v9 }
 0x462   : > { %v2189_v56 = vpack.c.b16 %v2167_v49, %v2166_v46  ;;  %v2165_v43 = vunpack.c.l.b16 %v3882_v33  ;;  %v2497_v27 = vor.u32 %v2542_v38, %v2494_v44 }
 0x463   : > { %v2180_v59 = vpack.c.b16 %v2149_v63, %v2148_v35 }
 0x464   : > { %v2188_v28 = vpack.c.b16 %v2165_v43, %v2164_v54 }
 0x465   : > { %2215 = vmatpush.bf16.msra.mxu0 %v2184_v21  ;;  %2229 = vmatpush.bf16.msra.mxu1 %v2192_v34 }
 0x469   : > { %2216 = vmatpush.bf16.msra.mxu0 %v2183_v12  ;;  %2230 = vmatpush.bf16.msra.mxu1 %v2191_v60 }
 0x46d   : > { %2217 = vmatpush.bf16.msra.mxu0 %v2182_v36  ;;  %2231 = vmatpush.bf16.msra.mxu1 %v2190_v62 }
 0x471   : > { %2218 = vmatpush.bf16.msra.mxu0 %v2181_v16  ;;  %2232 = vmatpush.bf16.msra.mxu1 %v2189_v56 }
 0x475   : > { %2219 = vmatpush.bf16.msra.mxu0 %v2180_v59  ;;  %2233 = vmatpush.bf16.msra.mxu1 %v2188_v28 }
 0x478   : > { %2220 = vmatmul.bf16.vlgmr.msra.gmra.mxu0 %v2493_v24  ;;  %2234 = vmatmul.bf16.vlgmr.msra.gmra.mxu1 %v2497_v27 }
 0x4f5   : > { %v2221_v17 = vpop.f32.mrf.mxu0  ;;  %v2235_v31 = vpop.f32.mrf.mxu1 }
 0x4f6   : > { %v2236_v51 = vadd.f32 %v2235_v31, %v2221_v17 }
 0x4f8   : > { %v2240_v26 = vadd.f32 %v2236_v51, %v2104_v30 }
 0x4fa   : > { %2242 = vst [vmem:[%s3819_s6] sm:$0xff] %v2240_v26 }
 0x4fd   : > { %v2223_v25 = vpop.f32.mrf.mxu0  ;;  %v2237_v29 = vpop.f32.mrf.mxu1 }
 0x4fe   : > { %v2238_v22 = vadd.f32 %v2237_v29, %v2223_v25 }
 0x500   : > { %v2241_v37 = vadd.f32 %v2238_v22, %v2105_v10 }
 0x502   : > { %2243 = vst [vmem:[%s3819_s6 + $0x8] sm:$0xff] %v2241_v37 }
 0x503 PF: > { %s16_s23 = sadd.s32 1, %s2835_s23   ;;  %s3883_s21 = smov %s2831_s22 }
 0x504   : > { %p13_p10 = scmp.ge.s32.totalorder %s16_s23, 5   ;;  %s3884_s22 = smov %s3886_s24 }
 0x506   :  { %15 = sbr.rel (!%p13_p10) target bundleno = 2 (0x2), region = 135 }
 0x50b   :  { %2255 = vsyncmov [#allocation5] }
 0x50e   :  { %s2256_s29 = vpop.sfrf %2255 }
 0x50f   :  { %p2500_p11 = scmp.ne.s32.totalorder %s2256_s29, 0 }
 0x511   :  { %2260 = shalt.err (%p2500_p11)  }

</bundles_post_ra>
